<compile_context>
chip_gen: v7x
topology: tpu7x:2x2x1
jax: 0.10.0
libtpu: 0.0.40
codegen_flags: <defaults>
</compile_context>

<pallas_src>
import functools

import jax
import jax.numpy as jnp
from jax.experimental import pallas as pl
from jax.experimental.pallas import tpu as pltpu

_C_OUT_PAD = 128   # lane-dense output tile width
_KSIZE = 3


# ----------------------------- Pallas kernel --------------------------------
def _make_conv_kernel(H, W):
    """Fused im2col + matmul + bias + SiLU kernel for one padded image."""

    def kernel(x_ref, w_ref, b_ref, o_ref):
        # x_ref: (1, H+2, W+2, Cp)  bf16  -- spatially padded NHWC image
        # w_ref: (3, 3, Cp, 128)    bf16  -- HWIO weights, zero padded
        # b_ref: (1, 128)           f32
        # o_ref: (1, H*W, 128)      f32   -- lane-dense output slab
        cp = x_ref.shape[-1]
        cop = o_ref.shape[-1]
        # Upcast the small halo'd tile once; all shifted-window slicing is
        # then done on an unpacked f32 value.
        x = x_ref[0].astype(jnp.float32)                      # (H+2, W+2, Cp)
        # Bias folded into the accumulator init (no separate add pass).
        acc = jnp.broadcast_to(b_ref[...], (H * W, cop)).astype(jnp.float32)
        for di in range(_KSIZE):
            for dj in range(_KSIZE):
                patch = x[di:di + H, dj:dj + W, :]            # (H, W, Cp)
                patch2d = patch.reshape(H * W, cp).astype(jnp.bfloat16)
                acc = acc + jnp.dot(patch2d, w_ref[di, dj],
                                    preferred_element_type=jnp.float32)
        # SiLU in f32 (exp runs on the EUP slot).  If this ever becomes the
        # binding unit, switch to pl.reciprocal(1 + exp(-acc), approx=True).
        o_ref[0] = (acc * jax.nn.sigmoid(acc)).astype(o_ref.dtype)

    return kernel


def _fused_conv_forward(im, w_kernel, bias2d, *, c_out):
    """im: (N, C_in, H, W) NCHW f32 -> (N, c_out, H, W) NCHW f32."""
    N, C, H, W = im.shape
    c_in_pad = w_kernel.shape[2]
    c_out_pad = w_kernel.shape[3]

    # Single layout conversion at the API boundary: NCHW -> padded NHWC bf16.
    x = jnp.transpose(im.astype(jnp.float32), (0, 2, 3, 1))
    x = jnp.pad(x, ((0, 0), (1, 1), (1, 1), (0, c_in_pad - C)))
    x = x.astype(jnp.bfloat16)

    out = pl.pallas_call(
        _make_conv_kernel(H, W),
        out_shape=jax.ShapeDtypeStruct((N, H * W, c_out_pad), jnp.float32),
        grid_spec=pltpu.PrefetchScalarGridSpec(
            num_scalar_prefetch=0,
            grid=(N,),
            in_specs=[
                pl.BlockSpec((1, H + 2, W + 2, c_in_pad),
                             lambda n: (n, 0, 0, 0)),
                pl.BlockSpec((_KSIZE, _KSIZE, c_in_pad, c_out_pad),
                             lambda n: (0, 0, 0, 0)),
                pl.BlockSpec((1, c_out_pad), lambda n: (0, 0)),
            ],
            out_specs=pl.BlockSpec((1, H * W, c_out_pad),
                                   lambda n: (n, 0, 0)),
        ),
        compiler_params=pltpu.CompilerParams(
            dimension_semantics=("parallel",)),
    )(x, w_kernel, bias2d)

    # Back to NCHW once, at the API boundary; drop the padded channels.
    y = out[:, :, :c_out].reshape(N, H, W, c_out)
    return jnp.transpose(y, (0, 3, 1, 2))


# --------------------------- module reimplementation -------------------------
class DetectMultiBackendPallas:
    """JAX/Pallas re-implementation of DetectMultiBackend's forward semantics."""

    def __init__(self, weights="yolov5s.pt", c_in=3, c_out=8, seed=0):
        w = str(weights[0] if isinstance(weights, list) else weights)
        self.pt, self.onnx = self.model_type(w)
        self.stride = 64
        self.names = [f"class{i}" for i in range(1000)]

        # Deterministic synthetic backend parameters (PyTorch conv weight
        # layout: (C_out, C_in, kh, kw)).
        key = jax.random.PRNGKey(seed)
        kw_, kb_ = jax.random.split(key)
        self.c_in, self.c_out, self.k = c_in, c_out, _KSIZE
        fan_in = c_in * _KSIZE * _KSIZE
        self.weight = jax.random.normal(
            kw_, (c_out, c_in, _KSIZE, _KSIZE), jnp.float32) / jnp.sqrt(fan_in)
        self.bias = 0.01 * jax.random.normal(kb_, (c_out,), jnp.float32)

        # Kernel-side layouts, built once: weight -> HWIO with C_in padded to
        # a sublane multiple and C_out padded to a full 128-lane tile (bf16);
        # bias -> (1, 128) f32.
        c_in_pad = max(8, ((c_in + 7) // 8) * 8)
        w_hwio = jnp.transpose(self.weight, (2, 3, 1, 0))   # (kh, kw, Cin, Cout)
        w_hwio = jnp.pad(w_hwio, ((0, 0), (0, 0),
                                  (0, c_in_pad - c_in),
                                  (0, _C_OUT_PAD - c_out)))
        self._w_kernel = w_hwio.astype(jnp.bfloat16)
        self._b2d = jnp.pad(self.bias,
                            (0, _C_OUT_PAD - c_out)).reshape(1, _C_OUT_PAD)

        self._jit_forward = jax.jit(
            functools.partial(_fused_conv_forward, c_out=c_out))

    @staticmethod
    def model_type(p="path/to/model.pt"):
        suffixes = [".pt", ".onnx"]  # export_formats().Suffix
        pt, onnx = (s in p for s in suffixes)
        return pt, onnx

    def forward(self, im, augment=False, visualize=False, val=False):
        # im: (N, C_in, H, W) float32, NCHW like PyTorch.
        im = jnp.asarray(im, jnp.float32)
        assert im.shape[1] == self.c_in
        y = self._jit_forward(im, self._w_kernel, self._b2d)
        return (y, []) if val else y

    __call__ = forward

    def warmup(self, imgsz=(1, 3, 16, 16), half=False):
        # TODO(synk): half-precision warmup path omitted; runs the f32 API only.
        if self.pt or self.onnx:
            self.forward(jnp.zeros(imgsz, jnp.float32))


# ----------------------------------- main ------------------------------------
if __name__ == "__main__":
    model = DetectMultiBackendPallas(weights="yolov5s.pt", c_in=3, c_out=8)
    model.warmup(imgsz=(1, 3, 16, 16))

    key = jax.random.PRNGKey(0)
    x = jax.random.normal(key, (2, 3, 16, 16), jnp.float32)  # NCHW input

    y = model(x, val=False)
    y = jax.block_until_ready(y)
    assert y.shape == (2, 8, 16, 16) and y.dtype == jnp.float32

    y_val, extras = model(x, val=True)
    jax.block_until_ready(y_val)
    assert extras == []

    # Reference: plain-JAX conv on the same bf16-quantized inputs, f32 accum,
    # bias + SiLU in f32 — validates the fused Pallas hot path.
    ref = jax.lax.conv_general_dilated(
        x.astype(jnp.bfloat16), model.weight.astype(jnp.bfloat16),
        window_strides=(1, 1), padding="SAME",
        dimension_numbers=("NCHW", "OIHW", "NCHW"),
        preferred_element_type=jnp.float32)
    ref = ref + model.bias.reshape(1, -1, 1, 1)
    ref = ref * jax.nn.sigmoid(ref)
    assert jnp.allclose(y, ref, atol=5e-3, rtol=5e-3), \
        float(jnp.max(jnp.abs(y - ref)))

    print("KERNEL_OK")
</pallas_src>

<mosaic_0001>
module attributes {stable_mosaic.version = 11 : i64} {
  func.func @kernel(%arg0: i32, %arg1: memref<1x18x18x8xbf16, #tpu.memory_space<vmem>>, %arg2: memref<3x3x8x128xbf16, #tpu.memory_space<vmem>>, %arg3: memref<1x128xf32, #tpu.memory_space<vmem>>, %arg4: memref<1x256x128xf32, #tpu.memory_space<vmem>>) attributes {dimension_semantics = [#tpu.dimension_semantics<parallel>], iteration_bounds = array<i64: 1>, scalar_prefetch = 0 : i64, scratch_operands = 0 : i64, tpu.core_type = #tpu.core_type<tc>, window_params = [{transform_indices = @transform_0, window_bounds = array<i64: 1, 18, 18, 8>}, {pipeline_mode = #tpu.pipeline_mode<synchronous>, transform_indices = @transform_1, window_bounds = array<i64: 3, 3, 8, 128>}, {pipeline_mode = #tpu.pipeline_mode<synchronous>, transform_indices = @transform_2, window_bounds = array<i64: 1, 128>}, {transform_indices = @transform_3, window_bounds = array<i64: 1, 256, 128>}]} {
    %c0 = arith.constant 0 : index
    %c0_0 = arith.constant 0 : index
    %c0_1 = arith.constant 0 : index
    %c0_2 = arith.constant 0 : index
    %0 = vector.load %arg1[%c0, %c0_0, %c0_1, %c0_2] : memref<1x18x18x8xbf16, #tpu.memory_space<vmem>>, vector<1x18x18x8xbf16>
    %1 = vector.shape_cast %0 : vector<1x18x18x8xbf16> to vector<18x18x8xbf16>
    %2 = arith.extf %1 : vector<18x18x8xbf16> to vector<18x18x8xf32>
    %c0_3 = arith.constant 0 : index
    %c0_4 = arith.constant 0 : index
    %3 = vector.load %arg3[%c0_3, %c0_4] : memref<1x128xf32, #tpu.memory_space<vmem>>, vector<1x128xf32>
    %4 = vector.shape_cast %3 : vector<1x128xf32> to vector<1x128xf32>
    %5 = vector.broadcast %4 : vector<1x128xf32> to vector<256x128xf32>
    %6 = vector.extract_strided_slice %2 {offsets = [0, 0, 0], sizes = [16, 16, 8], strides = [1, 1, 1]} : vector<18x18x8xf32> to vector<16x16x8xf32>
    %7 = vector.shape_cast %6 : vector<16x16x8xf32> to vector<256x8xf32>
    %8 = arith.truncf %7 : vector<256x8xf32> to vector<256x8xbf16>
    %c0_5 = arith.constant 0 : index
    %c0_6 = arith.constant 0 : index
    %c0_7 = arith.constant 0 : index
    %c0_8 = arith.constant 0 : index
    %9 = vector.load %arg2[%c0_5, %c0_6, %c0_7, %c0_8] : memref<3x3x8x128xbf16, #tpu.memory_space<vmem>>, vector<1x1x8x128xbf16>
    %10 = vector.shape_cast %9 : vector<1x1x8x128xbf16> to vector<8x128xbf16>
    %cst = arith.constant dense<0.000000e+00> : vector<256x128xf32>
    %11 = tpu.matmul %8, %10, %cst {dimension_numbers = #tpu.dot_dimension_numbers<[1], [0], [0], [1], [0, 0, 1, 1], [], []>} : vector<256x8xbf16>, vector<8x128xbf16>, vector<256x128xf32> -> vector<256x128xf32>
    %12 = arith.addf %5, %11 : vector<256x128xf32>
    %13 = vector.extract_strided_slice %2 {offsets = [0, 1, 0], sizes = [16, 16, 8], strides = [1, 1, 1]} : vector<18x18x8xf32> to vector<16x16x8xf32>
    %14 = vector.shape_cast %13 : vector<16x16x8xf32> to vector<256x8xf32>
    %15 = arith.truncf %14 : vector<256x8xf32> to vector<256x8xbf16>
    %c0_9 = arith.constant 0 : index
    %c1 = arith.constant 1 : index
    %c0_10 = arith.constant 0 : index
    %c0_11 = arith.constant 0 : index
    %16 = vector.load %arg2[%c0_9, %c1, %c0_10, %c0_11] : memref<3x3x8x128xbf16, #tpu.memory_space<vmem>>, vector<1x1x8x128xbf16>
    %17 = vector.shape_cast %16 : vector<1x1x8x128xbf16> to vector<8x128xbf16>
    %cst_12 = arith.constant dense<0.000000e+00> : vector<256x128xf32>
    %18 = tpu.matmul %15, %17, %cst_12 {dimension_numbers = #tpu.dot_dimension_numbers<[1], [0], [0], [1], [0, 0, 1, 1], [], []>} : vector<256x8xbf16>, vector<8x128xbf16>, vector<256x128xf32> -> vector<256x128xf32>
    %19 = arith.addf %12, %18 : vector<256x128xf32>
    %20 = vector.extract_strided_slice %2 {offsets = [0, 2, 0], sizes = [16, 16, 8], strides = [1, 1, 1]} : vector<18x18x8xf32> to vector<16x16x8xf32>
    %21 = vector.shape_cast %20 : vector<16x16x8xf32> to vector<256x8xf32>
    %22 = arith.truncf %21 : vector<256x8xf32> to vector<256x8xbf16>
    %c0_13 = arith.constant 0 : index
    %c2 = arith.constant 2 : index
    %c0_14 = arith.constant 0 : index
    %c0_15 = arith.constant 0 : index
    %23 = vector.load %arg2[%c0_13, %c2, %c0_14, %c0_15] : memref<3x3x8x128xbf16, #tpu.memory_space<vmem>>, vector<1x1x8x128xbf16>
    %24 = vector.shape_cast %23 : vector<1x1x8x128xbf16> to vector<8x128xbf16>
    %cst_16 = arith.constant dense<0.000000e+00> : vector<256x128xf32>
    %25 = tpu.matmul %22, %24, %cst_16 {dimension_numbers = #tpu.dot_dimension_numbers<[1], [0], [0], [1], [0, 0, 1, 1], [], []>} : vector<256x8xbf16>, vector<8x128xbf16>, vector<256x128xf32> -> vector<256x128xf32>
    %26 = arith.addf %19, %25 : vector<256x128xf32>
    %27 = vector.extract_strided_slice %2 {offsets = [1, 0, 0], sizes = [16, 16, 8], strides = [1, 1, 1]} : vector<18x18x8xf32> to vector<16x16x8xf32>
    %28 = vector.shape_cast %27 : vector<16x16x8xf32> to vector<256x8xf32>
    %29 = arith.truncf %28 : vector<256x8xf32> to vector<256x8xbf16>
    %c1_17 = arith.constant 1 : index
    %c0_18 = arith.constant 0 : index
    %c0_19 = arith.constant 0 : index
    %c0_20 = arith.constant 0 : index
    %30 = vector.load %arg2[%c1_17, %c0_18, %c0_19, %c0_20] : memref<3x3x8x128xbf16, #tpu.memory_space<vmem>>, vector<1x1x8x128xbf16>
    %31 = vector.shape_cast %30 : vector<1x1x8x128xbf16> to vector<8x128xbf16>
    %cst_21 = arith.constant dense<0.000000e+00> : vector<256x128xf32>
    %32 = tpu.matmul %29, %31, %cst_21 {dimension_numbers = #tpu.dot_dimension_numbers<[1], [0], [0], [1], [0, 0, 1, 1], [], []>} : vector<256x8xbf16>, vector<8x128xbf16>, vector<256x128xf32> -> vector<256x128xf32>
    %33 = arith.addf %26, %32 : vector<256x128xf32>
    %34 = vector.extract_strided_slice %2 {offsets = [1, 1, 0], sizes = [16, 16, 8], strides = [1, 1, 1]} : vector<18x18x8xf32> to vector<16x16x8xf32>
    %35 = vector.shape_cast %34 : vector<16x16x8xf32> to vector<256x8xf32>
    %36 = arith.truncf %35 : vector<256x8xf32> to vector<256x8xbf16>
    %c1_22 = arith.constant 1 : index
    %c1_23 = arith.constant 1 : index
    %c0_24 = arith.constant 0 : index
    %c0_25 = arith.constant 0 : index
    %37 = vector.load %arg2[%c1_22, %c1_23, %c0_24, %c0_25] : memref<3x3x8x128xbf16, #tpu.memory_space<vmem>>, vector<1x1x8x128xbf16>
    %38 = vector.shape_cast %37 : vector<1x1x8x128xbf16> to vector<8x128xbf16>
    %cst_26 = arith.constant dense<0.000000e+00> : vector<256x128xf32>
    %39 = tpu.matmul %36, %38, %cst_26 {dimension_numbers = #tpu.dot_dimension_numbers<[1], [0], [0], [1], [0, 0, 1, 1], [], []>} : vector<256x8xbf16>, vector<8x128xbf16>, vector<256x128xf32> -> vector<256x128xf32>
    %40 = arith.addf %33, %39 : vector<256x128xf32>
    %41 = vector.extract_strided_slice %2 {offsets = [1, 2, 0], sizes = [16, 16, 8], strides = [1, 1, 1]} : vector<18x18x8xf32> to vector<16x16x8xf32>
    %42 = vector.shape_cast %41 : vector<16x16x8xf32> to vector<256x8xf32>
    %43 = arith.truncf %42 : vector<256x8xf32> to vector<256x8xbf16>
    %c1_27 = arith.constant 1 : index
    %c2_28 = arith.constant 2 : index
    %c0_29 = arith.constant 0 : index
    %c0_30 = arith.constant 0 : index
    %44 = vector.load %arg2[%c1_27, %c2_28, %c0_29, %c0_30] : memref<3x3x8x128xbf16, #tpu.memory_space<vmem>>, vector<1x1x8x128xbf16>
    %45 = vector.shape_cast %44 : vector<1x1x8x128xbf16> to vector<8x128xbf16>
    %cst_31 = arith.constant dense<0.000000e+00> : vector<256x128xf32>
    %46 = tpu.matmul %43, %45, %cst_31 {dimension_numbers = #tpu.dot_dimension_numbers<[1], [0], [0], [1], [0, 0, 1, 1], [], []>} : vector<256x8xbf16>, vector<8x128xbf16>, vector<256x128xf32> -> vector<256x128xf32>
    %47 = arith.addf %40, %46 : vector<256x128xf32>
    %48 = vector.extract_strided_slice %2 {offsets = [2, 0, 0], sizes = [16, 16, 8], strides = [1, 1, 1]} : vector<18x18x8xf32> to vector<16x16x8xf32>
    %49 = vector.shape_cast %48 : vector<16x16x8xf32> to vector<256x8xf32>
    %50 = arith.truncf %49 : vector<256x8xf32> to vector<256x8xbf16>
    %c2_32 = arith.constant 2 : index
    %c0_33 = arith.constant 0 : index
    %c0_34 = arith.constant 0 : index
    %c0_35 = arith.constant 0 : index
    %51 = vector.load %arg2[%c2_32, %c0_33, %c0_34, %c0_35] : memref<3x3x8x128xbf16, #tpu.memory_space<vmem>>, vector<1x1x8x128xbf16>
    %52 = vector.shape_cast %51 : vector<1x1x8x128xbf16> to vector<8x128xbf16>
    %cst_36 = arith.constant dense<0.000000e+00> : vector<256x128xf32>
    %53 = tpu.matmul %50, %52, %cst_36 {dimension_numbers = #tpu.dot_dimension_numbers<[1], [0], [0], [1], [0, 0, 1, 1], [], []>} : vector<256x8xbf16>, vector<8x128xbf16>, vector<256x128xf32> -> vector<256x128xf32>
    %54 = arith.addf %47, %53 : vector<256x128xf32>
    %55 = vector.extract_strided_slice %2 {offsets = [2, 1, 0], sizes = [16, 16, 8], strides = [1, 1, 1]} : vector<18x18x8xf32> to vector<16x16x8xf32>
    %56 = vector.shape_cast %55 : vector<16x16x8xf32> to vector<256x8xf32>
    %57 = arith.truncf %56 : vector<256x8xf32> to vector<256x8xbf16>
    %c2_37 = arith.constant 2 : index
    %c1_38 = arith.constant 1 : index
    %c0_39 = arith.constant 0 : index
    %c0_40 = arith.constant 0 : index
    %58 = vector.load %arg2[%c2_37, %c1_38, %c0_39, %c0_40] : memref<3x3x8x128xbf16, #tpu.memory_space<vmem>>, vector<1x1x8x128xbf16>
    %59 = vector.shape_cast %58 : vector<1x1x8x128xbf16> to vector<8x128xbf16>
    %cst_41 = arith.constant dense<0.000000e+00> : vector<256x128xf32>
    %60 = tpu.matmul %57, %59, %cst_41 {dimension_numbers = #tpu.dot_dimension_numbers<[1], [0], [0], [1], [0, 0, 1, 1], [], []>} : vector<256x8xbf16>, vector<8x128xbf16>, vector<256x128xf32> -> vector<256x128xf32>
    %61 = arith.addf %54, %60 : vector<256x128xf32>
    %62 = vector.extract_strided_slice %2 {offsets = [2, 2, 0], sizes = [16, 16, 8], strides = [1, 1, 1]} : vector<18x18x8xf32> to vector<16x16x8xf32>
    %63 = vector.shape_cast %62 : vector<16x16x8xf32> to vector<256x8xf32>
    %64 = arith.truncf %63 : vector<256x8xf32> to vector<256x8xbf16>
    %c2_42 = arith.constant 2 : index
    %c2_43 = arith.constant 2 : index
    %c0_44 = arith.constant 0 : index
    %c0_45 = arith.constant 0 : index
    %65 = vector.load %arg2[%c2_42, %c2_43, %c0_44, %c0_45] : memref<3x3x8x128xbf16, #tpu.memory_space<vmem>>, vector<1x1x8x128xbf16>
    %66 = vector.shape_cast %65 : vector<1x1x8x128xbf16> to vector<8x128xbf16>
    %cst_46 = arith.constant dense<0.000000e+00> : vector<256x128xf32>
    %67 = tpu.matmul %64, %66, %cst_46 {dimension_numbers = #tpu.dot_dimension_numbers<[1], [0], [0], [1], [0, 0, 1, 1], [], []>} : vector<256x8xbf16>, vector<8x128xbf16>, vector<256x128xf32> -> vector<256x128xf32>
    %68 = arith.addf %61, %67 : vector<256x128xf32>
    %69 = arith.negf %68 : vector<256x128xf32>
    %70 = math.exp %69 : vector<256x128xf32>
    %cst_47 = arith.constant 1.000000e+00 : f32
    %71 = vector.broadcast %cst_47 : f32 to vector<256x128xf32>
    %72 = arith.addf %71, %70 : vector<256x128xf32>
    %73 = arith.divf %71, %72 : vector<256x128xf32>
    %74 = arith.mulf %68, %73 : vector<256x128xf32>
    %c0_48 = arith.constant 0 : index
    %c0_49 = arith.constant 0 : index
    %c0_50 = arith.constant 0 : index
    %75 = vector.load %arg4[%c0_48, %c0_49, %c0_50] : memref<1x256x128xf32, #tpu.memory_space<vmem>>, vector<1x256x128xf32>
    %76 = vector.shape_cast %75 : vector<1x256x128xf32> to vector<256x128xf32>
    %77 = vector.shape_cast %74 : vector<256x128xf32> to vector<1x256x128xf32>
    tpu.vector_store %arg4[%c0_48, %c0_49, %c0_50], %77 {strides = array<i32>} : memref<1x256x128xf32, #tpu.memory_space<vmem>>, vector<1x256x128xf32>,
    return
  }
  func.func @transform_0(%arg0: i32) -> (i32, i32, i32, i32) {
    %c0_i32 = arith.constant 0 : i32
    %c0_i32_0 = arith.constant 0 : i32
    %c0_i32_1 = arith.constant 0 : i32
    %c0_i32_2 = arith.constant 0 : i32
    return %arg0, %c0_i32, %c0_i32_0, %c0_i32_1 : i32, i32, i32, i32
  }
  func.func @transform_1(%arg0: i32) -> (i32, i32, i32, i32) {
    %c0_i32 = arith.constant 0 : i32
    %c0_i32_0 = arith.constant 0 : i32
    %c0_i32_1 = arith.constant 0 : i32
    %c0_i32_2 = arith.constant 0 : i32
    %c0_i32_3 = arith.constant 0 : i32
    return %c0_i32, %c0_i32_0, %c0_i32_1, %c0_i32_2 : i32, i32, i32, i32
  }
  func.func @transform_2(%arg0: i32) -> (i32, i32) {
    %c0_i32 = arith.constant 0 : i32
    %c0_i32_0 = arith.constant 0 : i32
    %c0_i32_1 = arith.constant 0 : i32
    return %c0_i32, %c0_i32_0 : i32, i32
  }
  func.func @transform_3(%arg0: i32) -> (i32, i32, i32) {
    %c0_i32 = arith.constant 0 : i32
    %c0_i32_0 = arith.constant 0 : i32
    %c0_i32_1 = arith.constant 0 : i32
    return %arg0, %c0_i32, %c0_i32_0 : i32, i32, i32
  }
}

</mosaic_0001>

<bundles_post_ra>
// kernel: _fused_conv_forward.1
= control target key start
LH: loop header
LB: loop body
LE: loop exit
PB: predicated region body
PF: predicated region fallthrough
CT: control target
= control target key end

     0   :  { %vm196_vm0 = vcmask 1043456   ;;  %vm147_vm1 = vcmask 64512   ;;  %vm441_vm2 = vcmask 1046528   ;;  %vm816_vm3 = vcmask 1045504   ;;  %s5032_s1 = inlined_call_operand.vmem [shape: bf16[3,3,8,128], index: 1, kind: input, shape index: {}]   ;;  %s5033_s0 = inlined_call_operand.vmem [shape: bf16[1,18,18,8], index: 0, kind: input, shape index: {}]   ;;  %s5034_s2 = inlined_call_operand.vmem [shape: f32[1,128], index: 2, kind: input, shape index: {}]   ;;  %s5035_s3 = inlined_call_operand.vmem [shape: f32[1,256,128], index: 3, kind: output, shape index: {}]  }
   0x1   :  { %v146_v0 = vld [vmem:[%s5032_s1] sm:$0xf]  ;;  %v3854_v2 = vld [vmem:[%s5032_s1 + $0x10] sm:$0xf]  ;;  %v2730_v5 = vld [vmem:[%s5032_s1 + $0x4] sm:$0xf] }
   0x2   :  { %v3849_v1 = vld [vmem:[%s5033_s0] sm:$0xff]   ;;  %3649 = vmatprep.subr.msk.bf16.mxu1 %vm196_vm0, %v146_v0  ;;  %v198_v3 = vsel %vm196_vm0, %v146_v0, 0  ;;  %3653 = vmatprep.subr.msk.bf16.mxu0 %vm196_vm0, %v3854_v2  ;;  %v3863_v4 = vld [vmem:[%s5033_s0 + $0xc] sm:$0xff]   ;;  %v3871_v6 = vld [vmem:[%s5033_s0 + $0x14] sm:$0x1]  ;;  %v3875_v7 = vsel %vm196_vm0, %v3854_v2, 0 }
   0x3   :  { %5068 = vst [vmem:[#allocation2_spill] sm:$0xff] %v3863_v4  ;;  %3054 = vmatpush3.bf16.msra.mxu1 %v198_v3  ;;  %5069 = vst [vmem:[#allocation3_spill] sm:$0xff] %v3875_v7  ;;  %v72_v8 = vunpack.c.l.bf16 %v3863_v4  ;;  %v2799_v9 = vld [vmem:[%s5032_s1 + $0x14] sm:$0xf]  ;;  %v3884_v10 = vld [vmem:[%s5033_s0 + $0x18] sm:$0xff]   ;;  %3055 = vmatprep.mubr.msk.bf16.mxu1 %vm147_vm1, %v3849_v1  ;;  %v621_v11 = vsel %vm196_vm0, %v2730_v5, 0  ;;  %v73_v13 = vunpack.c.h.bf16 %v3863_v4  ;;  %v74_v14 = vunpack.c.l.bf16 %v3871_v6 }
   0x4   :  { %3190 = vmatpush3.bf16.msra.mxu0 %v3875_v7  ;;  %v3893_v12 = vld [vmem:[%s5033_s0 + $0x20] sm:$0x1]  ;;  %3650 = vmatprep.subr.msk.bf16.mxu1 %vm196_vm0, %v2730_v5  ;;  %v75_v16 = vunpack.c.l.bf16 %v3884_v10  ;;  %v76_v17 = vunpack.c.h.bf16 %v3884_v10  ;;  %v3919_v24 = vld [vmem:[%s5033_s0 + $0x24] sm:$0xff]   ;;  %v1619_v27 = vsel %vm196_vm0, %v2799_v9, 0  ;;  %v3927_v28 = vld [vmem:[%s5033_s0 + $0x2c] sm:$0x1] }
   0x5   :  { %v447_v15 = vrot.slane %v72_v8, 1  ;;  %3655 = vmatprep.subr.msk.bf16.mxu0 %vm196_vm0, %v2799_v9  ;;  %v77_v18 = vunpack.c.l.bf16 %v3893_v12  ;;  %v448_v19 = vrot.slane %v73_v13, 1  ;;  %v450_v20 = vrot.slane %v74_v14, 1  ;;  %v3932_v29 = vld [vmem:[%s5033_s0 + $0x30] sm:$0xff]   ;;  %v3937_v30 = vld [vmem:[%s5033_s0 + $0x38] sm:$0x1] }
   0x6   :  { %3056 = vmatmul.mubr.msk.bf16.vlgmr.msra.gmra.mrb[0].mxu1 %vm147_vm1, %v3863_v4  ;;  %v452_v21 = vrot.slane %v75_v16, 1  ;;  %v453_v22 = vrot.slane %v76_v17, 1  ;;  %v78_v35 = vunpack.c.l.bf16 %v3919_v24  ;;  %v79_v36 = vunpack.c.h.bf16 %v3919_v24  ;;  %v3958_v41 = vld [vmem:[%s5033_s0 + $0x3c] sm:$0xff]   ;;  %v3963_v42 = vld [vmem:[%s5032_s1 + $0x18] sm:$0xf]  ;;  %v3997_v54 = vld [vmem:[%s5033_s0 + $0x48] sm:$0xff]  }
   0x7   :  { %3088 = vmatpush3.bf16.msra.mxu1 %v621_v11  ;;  %v455_v23 = vrot.slane %v77_v18, 1  ;;  %v449_v25 = vsel %vm441_vm2, %v447_v15, %v448_v19  ;;  %v451_v26 = vsel %vm441_vm2, %v448_v19, %v450_v20  ;;  %3059 = vmatprep.mubr.msk.bf16.mxu1 %vm147_vm1, %v3884_v10  ;;  %v80_v37 = vunpack.c.l.bf16 %v3927_v28  ;;  %v3974_v45 = vld [vmem:[%s5032_s1 + $0x8] sm:$0xf]  ;;  %v3992_v53 = vld [vmem:[%s5033_s0 + $0x44] sm:$0x1]  ;;  %v4024_v63 = vld [vmem:[%s5033_s0 + $0x54] sm:$0xff]  }
   0x8   :  { %v3939_v31 = vpack.c.bf16 %v451_v26, %v449_v25  ;;  %v454_v32 = vsel %vm441_vm2, %v452_v21, %v453_v22  ;;  %v81_v38 = vunpack.c.l.bf16 %v3932_v29  ;;  %v82_v39 = vunpack.c.h.bf16 %v3932_v29  ;;  %3651 = vmatprep.subr.msk.bf16.mxu1 %vm196_vm0, %v3974_v45  ;;  %v4009_v58 = vld [vmem:[%s5033_s0 + $0x50] sm:$0x1]  ;;  %v4031_v5 = vld [vmem:[%s5033_s0 + $0x5c] sm:$0x1] }
   0x9   :  { %v456_v33 = vsel %vm441_vm2, %v453_v22, %v455_v23  ;;  %v83_v40 = vunpack.c.l.bf16 %v3937_v30  ;;  %v457_v43 = vrot.slane %v78_v35, 1  ;;  %v458_v44 = vrot.slane %v79_v36, 1  ;;  %v4187_v30 = vld [vmem:[%s5032_s1 + $0x1c] sm:$0xf] }
   0xa   :  { %v3943_v34 = vpack.c.bf16 %v456_v33, %v454_v32  ;;  %3191 = vmatprep.mubr.msk.bf16.mxu0 %vm147_vm1, %v3939_v31  ;;  %v460_v46 = vrot.slane %v80_v37, 1  ;;  %v462_v47 = vrot.slane %v81_v38, 1  ;;  %v463_v48 = vrot.slane %v82_v39, 1 }
   0xb   :  { %v465_v49 = vrot.slane %v83_v40, 1  ;;  %v459_v50 = vsel %vm441_vm2, %v457_v43, %v458_v44  ;;  %v84_v51 = vunpack.c.l.bf16 %v3958_v41  ;;  %v85_v52 = vunpack.c.h.bf16 %v3958_v41 }
   0xc   :  { %3192 = vmatmul.mubr.msk.bf16.vlgmr.msra.gmra.mrb[0].mxu0 %vm147_vm1, %v3943_v34  ;;  %v461_v55 = vsel %vm441_vm2, %v458_v44, %v460_v46  ;;  %v464_v56 = vsel %vm441_vm2, %v462_v47, %v463_v48  ;;  %v86_v0 = vunpack.c.l.bf16 %v3992_v53  ;;  %v87_v3 = vunpack.c.l.bf16 %v3997_v54  ;;  %v4066_v44 = vld [vmem:[%s5033_s0 + $0x68] sm:$0x1] }
   0xd   :  { %3224 = vmatpush3.bf16.msra.mxu0 %v1619_v27  ;;  %v466_v57 = vsel %vm441_vm2, %v463_v48, %v465_v49  ;;  %v4011_v59 = vpack.c.bf16 %v461_v55, %v459_v50  ;;  %v467_v61 = vrot.slane %v84_v51, 1  ;;  %v468_v62 = vrot.slane %v85_v52, 1  ;;  %v4054_v27 = vld [vmem:[%s5033_s0 + $0x60] sm:$0xff]  }
   0xe   :  { %3060 = vmatmul.mubr.msk.bf16.gmra.mrb[4].mxu1 %vm147_vm1, %v3919_v24  ;;  %3656 = vmatprep.subr.msk.bf16.mxu0 %vm196_vm0, %v3963_v42  ;;  %v4013_v60 = vpack.c.bf16 %v466_v57, %v464_v56  ;;  %v88_v11 = vunpack.c.h.bf16 %v3997_v54  ;;  %v89_v15 = vunpack.c.l.bf16 %v4009_v58  ;;  %v470_v19 = vrot.slane %v86_v0, 1 }
   0xf   :  { %3063 = vmatprep.mubr.msk.bf16.mxu1 %vm147_vm1, %v3932_v29  ;;  %3195 = vmatprep.mubr.msk.bf16.mxu0 %vm147_vm1, %v4011_v59  ;;  %v469_v9 = vsel %vm441_vm2, %v467_v61, %v468_v62  ;;  %v472_v20 = vrot.slane %v87_v3, 1  ;;  %v90_v21 = vunpack.c.l.bf16 %v4024_v63  ;;  %v91_v22 = vunpack.c.h.bf16 %v4024_v63 }
  0x10   :  { %5070 = vst [vmem:[#allocation4_spill] sm:$0xff] %v4013_v60  ;;  %v473_v23 = vrot.slane %v88_v11, 1  ;;  %v475_v25 = vrot.slane %v89_v15, 1  ;;  %v92_v26 = vunpack.c.l.bf16 %v4031_v5  ;;  %v471_v32 = vsel %vm441_vm2, %v468_v62, %v470_v19 }
  0x11   :  { %v477_v33 = vrot.slane %v90_v21, 1  ;;  %v478_v43 = vrot.slane %v91_v22, 1  ;;  %v4068_v46 = vpack.c.bf16 %v471_v32, %v469_v9  ;;  %v822_v49 = vrot.slane %v72_v8, 2  ;;  %v4112_v32 = vld [vmem:[%s5033_s0 + $0x6c] sm:$0xff]  }
  0x12   :  { %v474_v47 = vsel %vm441_vm2, %v472_v20, %v473_v23  ;;  %v476_v48 = vsel %vm441_vm2, %v473_v23, %v475_v25  ;;  %v480_v55 = vrot.slane %v92_v26, 1  ;;  %v93_v56 = vunpack.c.l.bf16 %v4054_v27 }
  0x13   :  { %5071 = vst [vmem:[#allocation5_spill] sm:$0xff] %v4068_v46  ;;  %v479_v50 = vsel %vm441_vm2, %v477_v33, %v478_v43  ;;  %v823_v57 = vrot.slane %v73_v13, 2  ;;  %v4084_v61 = vpack.c.bf16 %v476_v48, %v474_v47  ;;  %v94_v62 = vunpack.c.h.bf16 %v4054_v27  ;;  %v4119_v47 = vld [vmem:[%s5033_s0 + $0x78] sm:$0xff]  }
  0x14   :  { %3196 = vmatmul.mubr.msk.bf16.gmra.mrb[4].mxu0 %vm147_vm1, %v4013_v60  ;;  %v95_v9 = vunpack.c.l.bf16 %v4066_v44  ;;  %v825_v8 = vrot.slane %v74_v14, 2  ;;  %v481_v19 = vsel %vm441_vm2, %v478_v43, %v480_v55  ;;  %v482_v20 = vrot.slane %v93_v56, 1  ;;  %v4283_v44 = vld [vmem:[%s5033_s0 + $0x8c] sm:$0x1] }
  0x15   :  { %3199 = vmatprep.mubr.msk.bf16.mxu0 %vm147_vm1, %v4068_v46  ;;  %5072 = vst [vmem:[#allocation6_spill] sm:$0xff] %v4084_v61  ;;  %v4093_v23 = vpack.c.bf16 %v481_v19, %v479_v50  ;;  %v483_v13 = vrot.slane %v94_v62, 1  ;;  %v824_v33 = vsel %vm816_vm3, %v822_v49, %v823_v57  ;;  %v827_v48 = vrot.slane %v75_v16, 2 }
  0x16   :  { %3064 = vmatmul.mubr.msk.bf16.gmra.mrb[8].mxu1 %vm147_vm1, %v3958_v41  ;;  %v485_v25 = vrot.slane %v95_v9, 1  ;;  %v826_v43 = vsel %vm816_vm3, %v823_v57, %v825_v8  ;;  %v828_v55 = vrot.slane %v76_v17, 2  ;;  %v830_v19 = vrot.slane %v77_v18, 2  ;;  %v4150_v17 = vld [vmem:[%s5033_s0 + $0x84] sm:$0xff]  }
  0x17   :  { %3067 = vmatprep.mubr.msk.bf16.mxu1 %vm147_vm1, %v3997_v54  ;;  %v484_v6 = vsel %vm441_vm2, %v482_v20, %v483_v13  ;;  %v4129_v20 = vpack.c.bf16 %v826_v43, %v824_v33  ;;  %v832_v49 = vrot.slane %v78_v35, 2  ;;  %v833_v57 = vrot.slane %v79_v36, 2  ;;  %v4157_v35 = vld [vmem:[%s5033_s0 + $0x90] sm:$0xff]  }
  0x18   :  { %v486_v14 = vsel %vm441_vm2, %v483_v13, %v485_v25  ;;  %v835_v8 = vrot.slane %v80_v37, 2  ;;  %v829_v12 = vsel %vm816_vm3, %v827_v48, %v828_v55  ;;  %v831_v16 = vsel %vm816_vm3, %v828_v55, %v830_v19  ;;  %v4209_v55 = vld [vmem:[%s5033_s0 + $0xa8] sm:$0xff]  }
  0x19   :  { %v4123_v50 = vpack.c.bf16 %v486_v14, %v484_v6  ;;  %v834_v18 = vsel %vm816_vm3, %v832_v49, %v833_v57  ;;  %v842_v36 = vrot.slane %v84_v51, 2  ;;  %v843_v37 = vrot.slane %v85_v52, 2 }
  0x1a   :  { %v836_v28 = vsel %vm816_vm3, %v833_v57, %v835_v8  ;;  %v4163_v13 = vpack.c.bf16 %v831_v16, %v829_v12  ;;  %v837_v25 = vrot.slane %v81_v38, 2  ;;  %v838_v6 = vrot.slane %v82_v39, 2  ;;  %v4182_v38 = vld [vmem:[%s5033_s0 + $0x8] sm:$0x1] }
  0x1b   :  { %v840_v14 = vrot.slane %v83_v40, 2  ;;  %v1821_v33 = vsel %vm196_vm0, %v3963_v42, 0  ;;  %v4173_v43 = vpack.c.bf16 %v836_v28, %v834_v18  ;;  %v845_v51 = vrot.slane %v86_v0, 2  ;;  %v4196_v42 = vld [vmem:[%s5033_s0 + $0x9c] sm:$0xff]  }
  0x1c   :  { %3200 = vmatmul.mubr.msk.bf16.gmra.mrb[8].mxu0 %vm147_vm1, %v4084_v61  ;;  %v839_v39 = vsel %vm816_vm3, %v837_v25, %v838_v6  ;;  %v844_v52 = vsel %vm816_vm3, %v842_v36, %v843_v37  ;;  %v69_v0 = vunpack.c.l.bf16 %v3849_v1  ;;  %v70_v48 = vunpack.c.h.bf16 %v3849_v1 }
  0x1d   :  { %3203 = vmatprep.mubr.msk.bf16.mxu0 %vm147_vm1, %v4093_v23  ;;  %v841_v40 = vsel %vm816_vm3, %v838_v6, %v840_v14  ;;  %v846_v53 = vsel %vm816_vm3, %v843_v37, %v845_v51  ;;  %v71_v19 = vunpack.c.l.bf16 %v4182_v38  ;;  %v847_v8 = vrot.slane %v87_v3, 2 }
  0x1e   :  { %3068 = vmatmul.mubr.msk.bf16.gmra.mrb[12].mxu1 %vm147_vm1, %v4024_v63  ;;  %v4214_v49 = vpack.c.bf16 %v841_v40, %v839_v39  ;;  %v4216_v57 = vpack.c.bf16 %v846_v53, %v844_v52  ;;  %v848_v1 = vrot.slane %v88_v11, 2  ;;  %v850_v12 = vrot.slane %v89_v15, 2  ;;  %v4235_v11 = vld [vmem:[%s5033_s0 + $0x74] sm:$0x1] }
  0x1f   :  { %3071 = vmatprep.mubr.msk.bf16.mxu1 %vm147_vm1, %v4054_v27  ;;  %v852_v16 = vrot.slane %v90_v21, 2  ;;  %v853_v18 = vrot.slane %v91_v22, 2  ;;  %v855_v28 = vrot.slane %v92_v26, 2  ;;  %v442_v36 = vrot.slane %v69_v0, 1  ;;  %v4249_v21 = vld [vmem:[%s5033_s0 + $0xb4] sm:$0xff]  }
  0x20   :  { %v443_v37 = vrot.slane %v70_v48, 1  ;;  %v445_v3 = vrot.slane %v71_v19, 1  ;;  %v5050_v58 = vunpack.c.l.bf16 %v4112_v32  ;;  %v849_v5 = vsel %vm816_vm3, %v847_v8, %v848_v1 }
  0x21   :  { %v851_v15 = vsel %vm816_vm3, %v848_v1, %v850_v12  ;;  %v5049_v22 = vunpack.c.h.bf16 %v4112_v32  ;;  %v854_v26 = vsel %vm816_vm3, %v852_v16, %v853_v18  ;;  %v856_v25 = vsel %vm816_vm3, %v853_v18, %v855_v28 }
  0x22   :  { %v5048_v6 = vunpack.c.l.bf16 %v4235_v11  ;;  %v444_v14 = vsel %vm441_vm2, %v442_v36, %v443_v37  ;;  %v4259_v51 = vpack.c.bf16 %v851_v15, %v849_v5  ;;  %v4261_v39 = vpack.c.bf16 %v856_v25, %v854_v26 }
  0x23   :  { %v857_v40 = vrot.slane %v93_v56, 2  ;;  %v858_v52 = vrot.slane %v94_v62, 2  ;;  %v860_v53 = vrot.slane %v95_v9, 2  ;;  %v862_v8 = vrot.slane %v5050_v58, 2  ;;  %v4278_v56 = vld [vmem:[%s5033_s0 + $0x80] sm:$0x1] }
  0x24   :  { %3204 = vmatmul.mubr.msk.bf16.gmra.mrb[12].mxu0 %vm147_vm1, %v4123_v50  ;;  %v863_v1 = vrot.slane %v5049_v22, 2  ;;  %v865_v16 = vrot.slane %v5048_v6, 2  ;;  %v817_v62 = vrot.slane %v69_v0, 2  ;;  %v818_v9 = vrot.slane %v70_v48, 2 }
  0x25   :  { %3225 = vmatprep.mubr.msk.bf16.mxu0 %vm147_vm1, %v4129_v20  ;;  %v5047_v18 = vunpack.c.l.bf16 %v4119_v47  ;;  %v5040_v28 = vunpack.c.h.bf16 %v4119_v47  ;;  %v5038_v36 = vunpack.c.l.bf16 %v4150_v17  ;;  %v861_v0 = vsel %vm816_vm3, %v858_v52, %v860_v53 }
  0x26   :  { %3072 = vmatmul.mubr.msk.bf16.gmra.mrb[16].mxu1 %vm147_vm1, %v4112_v32  ;;  %v5039_v48 = vunpack.c.l.bf16 %v4278_v56  ;;  %v864_v5 = vsel %vm816_vm3, %v862_v8, %v863_v1  ;;  %v866_v15 = vsel %vm816_vm3, %v863_v1, %v865_v16  ;;  %v5036_v26 = vunpack.c.l.bf16 %v4283_v44 }
  0x27   :  { %3075 = vmatprep.mubr.msk.bf16.mxu1 %vm147_vm1, %v4119_v47  ;;  %v867_v25 = vrot.slane %v5047_v18, 2  ;;  %v4324_v16 = vsel %vm816_vm3, %v817_v62, %v818_v9 }
  0x28   :  { %v870_v53 = vrot.slane %v5039_v48, 2  ;;  %v875_v1 = vrot.slane %v5036_v26, 2  ;;  %v5045_v26 = vunpack.c.h.bf16 %v4157_v35 }
  0x2c   :  { %3226 = vmatmul.mubr.msk.bf16.vlgmr.msra.gmra.mrb[0].mxu0 %vm147_vm1, %v4163_v13 }
  0x2d   :  { %3258 = vmatpush3.bf16.msra.mxu0 %v1821_v33  ;;  %3229 = vmatprep.mubr.msk.bf16.mxu0 %vm147_vm1, %v4173_v43  ;;  %v446_v33 = vsel %vm441_vm2, %v443_v37, %v445_v3  ;;  %v859_v37 = vsel %vm816_vm3, %v857_v40, %v858_v52  ;;  %v5037_v3 = vunpack.c.h.bf16 %v4150_v17  ;;  %v872_v40 = vrot.slane %v5038_v36, 2 }
  0x2e   :  { %3076 = vmatmul.mubr.msk.bf16.gmra.mrb[20].mxu1 %vm147_vm1, %v4150_v17  ;;  %3657 = vmatprep.subr.msk.bf16.mxu0 %vm196_vm0, %v4187_v30  ;;  %v554_v12 = vpack.c.bf16 %v446_v33, %v444_v14  ;;  %v4304_v14 = vpack.c.bf16 %v861_v0, %v859_v37  ;;  %v868_v33 = vrot.slane %v5040_v28, 2  ;;  %v4310_v52 = vpack.c.bf16 %v866_v15, %v864_v5  ;;  %v4333_v5 = vld [vmem:[%s5033_s0 + $0xa4] sm:$0x1] }
  0x2f   :  { %3079 = vmatprep.mubr.msk.bf16.mxu1 %vm147_vm1, %v4157_v35  ;;  %v873_v8 = vrot.slane %v5037_v3, 2  ;;  %v820_v37 = vrot.slane %v71_v19, 2  ;;  %v996_v0 = vsel %vm196_vm0, %v3974_v45, 0  ;;  %v5046_v15 = vunpack.c.l.bf16 %v4157_v35  ;;  %v4346_v45 = vld [vmem:[%s5032_s1 + $0xc] sm:$0xf] }
  0x30   :  { %v5043_v3 = vunpack.c.l.bf16 %v4196_v42  ;;  %v869_v19 = vsel %vm816_vm3, %v867_v25, %v868_v33  ;;  %v871_v62 = vsel %vm816_vm3, %v868_v33, %v870_v53  ;;  %v5042_v28 = vunpack.c.l.bf16 %v4333_v5 }
  0x31   :  { %v4341_v38 = vsel %vm816_vm3, %v818_v9, %v820_v37  ;;  %v5041_v37 = vunpack.c.h.bf16 %v4196_v42  ;;  %v876_v48 = vsel %vm816_vm3, %v873_v8, %v875_v1  ;;  %v4365_v25 = vpack.c.bf16 %v871_v62, %v869_v19  ;;  %v4384_v62 = vld [vmem:[%s5033_s0 + $0xb0] sm:$0x1] }
  0x32   :  { %v877_v33 = vrot.slane %v5046_v15, 2  ;;  %v878_v53 = vrot.slane %v5045_v26, 2  ;;  %v885_v19 = vrot.slane %v5042_v28, 2  ;;  %v5055_v9 = vunpack.c.h.bf16 %v4209_v55 }
  0x33   :  { %v883_v1 = vrot.slane %v5041_v37, 2  ;;  %v5053_v37 = vunpack.c.l.bf16 %v4249_v21  ;;  %v5051_v26 = vunpack.c.h.bf16 %v4249_v21 }
  0x34   :  { %3230 = vmatmul.mubr.msk.bf16.gmra.mrb[4].mxu0 %vm147_vm1, %v4214_v49  ;;  %v879_v28 = vsel %vm816_vm3, %v877_v33, %v878_v53 }
  0x35   :  { %3233 = vmatprep.mubr.msk.bf16.mxu0 %vm147_vm1, %v4216_v57  ;;  %v886_v18 = vsel %vm816_vm3, %v883_v1, %v885_v19 }
  0x36   :  { %3080 = vmatmul.mubr.msk.bf16.gmra.mrb[24].mxu1 %vm147_vm1, %v4196_v42 }
  0x37   :  { %3083 = vmatprep.mubr.msk.bf16.mxu1 %vm147_vm1, %v4209_v55 }
  0x3c   :  { %3234 = vmatmul.mubr.msk.bf16.gmra.mrb[8].mxu0 %vm147_vm1, %v4259_v51 }
  0x3d   :  { %3237 = vmatprep.mubr.msk.bf16.mxu0 %vm147_vm1, %v4261_v39 }
  0x3e   :  { %3084 = vmatmul.mubr.msk.bf16.gmra.mrb[28].mxu1 %vm147_vm1, %v4249_v21 }
  0x3f   :  { %3089 = vmatprep.mubr.msk.bf16.mxu1 %vm147_vm1, %v554_v12  ;;  %v4321_v12 = vld [vmem:[%s5033_s0 + $0x98] sm:$0x1] }
  0x40   :  { %v5044_v36 = vunpack.c.l.bf16 %v4321_v12 }
  0x44   :  { %3238 = vmatmul.mubr.msk.bf16.gmra.mrb[12].mxu0 %vm147_vm1, %v4304_v14 }
  0x45   :  { %3241 = vmatprep.mubr.msk.bf16.mxu0 %vm147_vm1, %v4310_v52 }
  0x46   :  { %3090 = vmatmul.mubr.msk.bf16.vlgmr.msra.gmra.mrb[0].mxu1 %vm147_vm1, %v3939_v31  ;;  %v874_v31 = vsel %vm816_vm3, %v872_v40, %v873_v8  ;;  %v880_v40 = vrot.slane %v5044_v36, 2  ;;  %v882_v8 = vrot.slane %v5043_v3, 2  ;;  %v5054_v36 = vunpack.c.l.bf16 %v4384_v62 }
  0x47   :  { %3122 = vmatpush3.bf16.msra.mxu1 %v996_v0  ;;  %3093 = vmatprep.mubr.msk.bf16.mxu1 %vm147_vm1, %v3943_v34  ;;  %v4371_v0 = vpack.c.bf16 %v876_v48, %v874_v31  ;;  %v4389_v48 = vld [vmem:[%s5033_s0 + $0xbc] sm:$0x1]  ;;  %v5056_v31 = vunpack.c.l.bf16 %v4209_v55 }
  0x48   :  { %3652 = vmatprep.subr.msk.bf16.mxu1 %vm196_vm0, %v4346_v45  ;;  %v881_v3 = vsel %vm816_vm3, %v878_v53, %v880_v40  ;;  %v884_v15 = vsel %vm816_vm3, %v882_v8, %v883_v1  ;;  %v5052_v6 = vunpack.c.l.bf16 %v4389_v48  ;;  %v888_v53 = vrot.slane %v5055_v9, 2  ;;  %v4422_v8 = vld [vmem:[%s5033_s0 + $0xc0] sm:$0xff]  }
  0x49   :  { %v4409_v22 = vpack.c.bf16 %v881_v3, %v879_v28  ;;  %v887_v33 = vrot.slane %v5056_v31, 2  ;;  %v4415_v40 = vpack.c.bf16 %v886_v18, %v884_v15  ;;  %v890_v58 = vrot.slane %v5054_v36, 2  ;;  %v65_v18 = vld [vmem:[%s5033_s0 + $0xc8] sm:$0x1] }
  0x4a   :  { %v892_v28 = vrot.slane %v5053_v37, 2  ;;  %v893_v3 = vrot.slane %v5051_v26, 2  ;;  %v895_v1 = vrot.slane %v5052_v6, 2  ;;  %v117_v15 = vunpack.c.l.bf16 %v4422_v8 }
  0x4b   :  { %5073 = vst [vmem:[#allocation7_spill] sm:$0xff] %v4409_v22  ;;  %5074 = vst [vmem:[#allocation8_spill] sm:$0xff] %v4415_v40  ;;  %v118_v19 = vunpack.c.h.bf16 %v4422_v8  ;;  %v889_v26 = vsel %vm816_vm3, %v887_v33, %v888_v53  ;;  %v891_v6 = vsel %vm816_vm3, %v888_v53, %v890_v58  ;;  %v119_v37 = vunpack.c.l.bf16 %v65_v18 }
  0x4c   :  { %3242 = vmatmul.mubr.msk.bf16.gmra.mrb[16].mxu0 %vm147_vm1, %v4365_v25  ;;  %v894_v36 = vsel %vm816_vm3, %v892_v28, %v893_v3  ;;  %v896_v9 = vsel %vm816_vm3, %v893_v3, %v895_v1  ;;  %v4447_v31 = vpack.c.bf16 %v891_v6, %v889_v26  ;;  %v1605_v7 = vrot.slane %v117_v15, 2 }
  0x4d   :  { %3245 = vmatprep.mubr.msk.bf16.mxu0 %vm147_vm1, %v4371_v0  ;;  %v1606_v4 = vrot.slane %v118_v19, 2  ;;  %v5077_v58 = vunpack.c.h.bf16 %v4112_v32  ;;  %v5078_v18 = vunpack.c.l.bf16 %v4235_v11  ;;  %v5079_v28 = vunpack.c.l.bf16 %v4119_v47 }
  0x4e   :  { %3094 = vmatmul.mubr.msk.bf16.gmra.mrb[4].mxu1 %vm147_vm1, %v4011_v59  ;;  %v5080_v6 = vunpack.c.h.bf16 %v4119_v47  ;;  %v5081_v3 = vunpack.c.l.bf16 %v4278_v56  ;;  %v1397_v1 = vrot.slane %v118_v19, 1  ;;  %v5083_v19 = vunpack.c.h.bf16 %v4150_v17 }
  0x4f   :  { %3097 = vmatprep.mubr.msk.bf16.mxu1 %vm147_vm1, %v4013_v60  ;;  %v488_v53 = vrot.slane %v5077_v58, 1  ;;  %v492_v60 = vrot.slane %v5079_v28, 1  ;;  %v1399_v58 = vrot.slane %v119_v37, 1 }
  0x50   :  { %v493_v26 = vrot.slane %v5080_v6, 1 }
  0x54   :  { %3246 = vmatmul.mubr.msk.bf16.gmra.mrb[20].mxu0 %vm147_vm1, %v4409_v22  ;;  %v1608_v22 = vrot.slane %v119_v37, 2  ;;  %v5082_v37 = vunpack.c.l.bf16 %v4150_v17 }
  0x55   :  { %3249 = vmatprep.mubr.msk.bf16.mxu0 %vm147_vm1, %v4415_v40  ;;  %v5076_v40 = vunpack.c.l.bf16 %v4112_v32 }
  0x56   :  { %3098 = vmatmul.mubr.msk.bf16.gmra.mrb[8].mxu1 %vm147_vm1, %v4068_v46  ;;  %v4449_v46 = vpack.c.bf16 %v896_v9, %v894_v36  ;;  %v495_v36 = vrot.slane %v5081_v3, 1  ;;  %v1607_v9 = vsel %vm816_vm3, %v1605_v7, %v1606_v4  ;;  %v1609_v11 = vsel %vm816_vm3, %v1606_v4, %v1608_v22 }
  0x57   :  { %3101 = vmatprep.mubr.msk.bf16.mxu1 %vm147_vm1, %v4084_v61  ;;  %v487_v33 = vrot.slane %v5076_v40, 1  ;;  %v490_v61 = vrot.slane %v5078_v18, 1  ;;  %v1396_v40 = vrot.slane %v117_v15, 1  ;;  %v494_v7 = vsel %vm441_vm2, %v492_v60, %v493_v26 }
  0x58   :  { %5075 = vst [vmem:[#allocation9_spill] sm:$0xff] %v4449_v46  ;;  %v496_v28 = vsel %vm441_vm2, %v493_v26, %v495_v36  ;;  %v1400_v3 = vsel %vm441_vm2, %v1397_v1, %v1399_v58  ;;  %v497_v15 = vrot.slane %v5082_v37, 1  ;;  %v5084_v60 = vunpack.c.l.bf16 %v4283_v44 }
  0x59   :  { %v489_v56 = vsel %vm441_vm2, %v487_v33, %v488_v53  ;;  %v491_v18 = vsel %vm441_vm2, %v488_v53, %v490_v61  ;;  %v1398_v6 = vsel %vm441_vm2, %v1396_v40, %v1397_v1  ;;  %v498_v61 = vrot.slane %v5083_v19, 1 }
  0x5a   :  { %v4481_v4 = vpack.c.bf16 %v1400_v3, %v1398_v6  ;;  %v4483_v22 = vpack.c.bf16 %v491_v18, %v489_v56  ;;  %v4489_v33 = vpack.c.bf16 %v496_v28, %v494_v7  ;;  %v500_v53 = vrot.slane %v5084_v60, 1 }
  0x5b   :  { %v5085_v26 = vunpack.c.l.bf16 %v4157_v35  ;;  %v5087_v40 = vunpack.c.l.bf16 %v4321_v12  ;;  %v499_v44 = vsel %vm441_vm2, %v497_v15, %v498_v61  ;;  %v5088_v18 = vunpack.c.l.bf16 %v4196_v42 }
  0x5c   :  { %3250 = vmatmul.mubr.msk.bf16.gmra.mrb[24].mxu0 %vm147_vm1, %v4447_v31  ;;  %v501_v58 = vsel %vm441_vm2, %v498_v61, %v500_v53  ;;  %v5089_v6 = vunpack.c.h.bf16 %v4196_v42  ;;  %v2033_v37 = vsel %vm196_vm0, %v4187_v30, 0  ;;  %v5090_v15 = vunpack.c.l.bf16 %v4333_v5  ;;  %v2851_v30 = vld [vmem:[%s5032_s1 + $0x20] sm:$0xf] }
  0x5d   :  { %3253 = vmatprep.mubr.msk.bf16.mxu0 %vm147_vm1, %v4449_v46  ;;  %v4479_v46 = vpack.c.bf16 %v1609_v11, %v1607_v9  ;;  %v502_v36 = vrot.slane %v5085_v26, 1  ;;  %v5086_v9 = vunpack.c.h.bf16 %v4157_v35  ;;  %v505_v1 = vrot.slane %v5087_v40, 1 }
  0x5e   :  { %3102 = vmatmul.mubr.msk.bf16.gmra.mrb[12].mxu1 %vm147_vm1, %v4093_v23  ;;  %v507_v7 = vrot.slane %v5088_v18, 1  ;;  %v4513_v28 = vpack.c.bf16 %v501_v58, %v499_v44  ;;  %v508_v3 = vrot.slane %v5089_v6, 1  ;;  %v510_v61 = vrot.slane %v5090_v15, 1 }
  0x5f   :  { %3105 = vmatprep.mubr.msk.bf16.mxu1 %vm147_vm1, %v4123_v50  ;;  %v503_v11 = vrot.slane %v5086_v9, 1  ;;  %v5091_v60 = vunpack.c.l.bf16 %v4209_v55  ;;  %v5092_v26 = vunpack.c.h.bf16 %v4209_v55  ;;  %v5093_v9 = vunpack.c.l.bf16 %v4384_v62 }
  0x60   :  { %v509_v5 = vsel %vm441_vm2, %v507_v7, %v508_v3  ;;  %v511_v62 = vsel %vm441_vm2, %v508_v3, %v510_v61  ;;  %v5094_v58 = vunpack.c.l.bf16 %v4249_v21  ;;  %v5096_v7 = vunpack.c.l.bf16 %v4389_v48 }
  0x61   :  { %v504_v56 = vsel %vm441_vm2, %v502_v36, %v503_v11  ;;  %v506_v12 = vsel %vm441_vm2, %v503_v11, %v505_v1  ;;  %v512_v53 = vrot.slane %v5091_v60, 1  ;;  %v513_v36 = vrot.slane %v5092_v26, 1 }
  0x62   :  { %v4519_v19 = vpack.c.bf16 %v506_v12, %v504_v56  ;;  %v515_v11 = vrot.slane %v5093_v9, 1  ;;  %v4545_v44 = vpack.c.bf16 %v511_v62, %v509_v5  ;;  %v517_v56 = vrot.slane %v5094_v58, 1  ;;  %v5100_v58 = vld [vmem:[#allocation5_spill] sm:$0xff] }
  0x63   :  { %v514_v40 = vsel %vm441_vm2, %v512_v53, %v513_v36  ;;  %v5095_v12 = vunpack.c.h.bf16 %v4249_v21  ;;  %v5097_v48 = vpack.c.bf16 %v4341_v38, %v4324_v16  ;;  %v1198_v60 = vsel %vm196_vm0, %v4346_v45, 0  ;;  %v68_v38 = vld [vmem:[%s5033_s0 + $0xd4] sm:$0x1] }
  0x64   :  { %3254 = vmatmul.mubr.msk.bf16.gmra.mrb[28].mxu0 %vm147_vm1, %v4479_v46  ;;  %v516_v1 = vsel %vm441_vm2, %v513_v36, %v515_v11  ;;  %v122_v26 = vunpack.c.l.bf16 %v68_v38  ;;  %v2242_v62 = vsel %vm196_vm0, %v2851_v30, 0 }
  0x65   :  { %3259 = vmatprep.mubr.msk.bf16.mxu0 %vm147_vm1, %v3884_v10  ;;  %v518_v18 = vrot.slane %v5095_v12, 1  ;;  %v4551_v6 = vpack.c.bf16 %v516_v1, %v514_v40  ;;  %v5098_v40 = vld [vmem:[#allocation4_spill] sm:$0xff]  ;;  %v5099_v1 = vld [vmem:[#allocation7_spill] sm:$0xff] }
  0x66   :  { %3106 = vmatmul.mubr.msk.bf16.gmra.mrb[16].mxu1 %vm147_vm1, %v4483_v22  ;;  %v2231_v9 = vrot.slane %v122_v26, 2  ;;  %v5105_v12 = vld [vmem:[#allocation3_spill] sm:$0xff] }
  0x67   :  { %3109 = vmatprep.mubr.msk.bf16.mxu1 %vm147_vm1, %v4489_v33  ;;  %v519_v3 = vsel %vm441_vm2, %v517_v56, %v518_v18  ;;  %v5104_v56 = vld [vmem:[#allocation2_spill] sm:$0xff] }
  0x6c   :  { %3260 = vmatmul.mubr.msk.bf16.vlgmr.msra.gmra.mrb[0].mxu0 %vm147_vm1, %v3919_v24 }
  0x6d   :  { %3292 = vmatpush3.bf16.msra.mxu0 %v2033_v37  ;;  %3263 = vmatprep.mubr.msk.bf16.mxu0 %vm147_vm1, %v3932_v29  ;;  %v520_v37 = vrot.slane %v5096_v7, 1 }
  0x6e   :  { %3110 = vmatmul.mubr.msk.bf16.gmra.mrb[20].mxu1 %vm147_vm1, %v4513_v28  ;;  %3658 = vmatprep.subr.msk.bf16.mxu0 %vm196_vm0, %v2851_v30  ;;  %v5102_v30 = vld [vmem:[#allocation6_spill] sm:$0xff] }
  0x6f   :  { %3113 = vmatprep.mubr.msk.bf16.mxu1 %vm147_vm1, %v4519_v19  ;;  %v521_v15 = vsel %vm441_vm2, %v518_v18, %v520_v37 }
  0x70   :  { %v4565_v61 = vpack.c.bf16 %v521_v15, %v519_v3 }
  0x74   :  { %3264 = vmatmul.mubr.msk.bf16.gmra.mrb[4].mxu0 %vm147_vm1, %v3958_v41 }
  0x75   :  { %3267 = vmatprep.mubr.msk.bf16.mxu0 %vm147_vm1, %v3997_v54 }
  0x76   :  { %3114 = vmatmul.mubr.msk.bf16.gmra.mrb[24].mxu1 %vm147_vm1, %v4545_v44 }
  0x77   :  { %3117 = vmatprep.mubr.msk.bf16.mxu1 %vm147_vm1, %v4551_v6 }
  0x7c   :  { %3268 = vmatmul.mubr.msk.bf16.gmra.mrb[8].mxu0 %vm147_vm1, %v4024_v63 }
  0x7d   :  { %3271 = vmatprep.mubr.msk.bf16.mxu0 %vm147_vm1, %v4054_v27 }
  0x7e   :  { %3118 = vmatmul.mubr.msk.bf16.gmra.mrb[28].mxu1 %vm147_vm1, %v4565_v61 }
  0x7f   :  { %3123 = vmatprep.mubr.msk.bf16.mxu1 %vm147_vm1, %v5097_v48 }
  0x84   :  { %3272 = vmatmul.mubr.msk.bf16.gmra.mrb[12].mxu0 %vm147_vm1, %v4112_v32 }
  0x85   :  { %3275 = vmatprep.mubr.msk.bf16.mxu0 %vm147_vm1, %v4119_v47 }
  0x86   :  { %3124 = vmatmul.mubr.msk.bf16.vlgmr.msra.gmra.mrb[0].mxu1 %vm147_vm1, %v4129_v20 }
  0x87   :  { %3156 = vmatpush3.bf16.msra.mxu1 %v1198_v60  ;;  %3127 = vmatprep.mubr.msk.bf16.mxu1 %vm147_vm1, %v4163_v13 }
  0x88   :  { %3654 = vmatprep.subr.msk.bf16.mxu1 %vm196_vm0, %v3854_v2  ;;  %v66_v2 = vld [vmem:[%s5033_s0 + $0xcc] sm:$0xff]  }
  0x89   :  { %v120_v20 = vunpack.c.l.bf16 %v66_v2  ;;  %v121_v16 = vunpack.c.h.bf16 %v66_v2 }
  0x8b   :  { %v2228_v45 = vrot.slane %v120_v20, 2  ;;  %v2229_v53 = vrot.slane %v121_v16, 2 }
  0x8c   :  { %3276 = vmatmul.mubr.msk.bf16.gmra.mrb[16].mxu0 %vm147_vm1, %v4150_v17 }
  0x8d   :  { %3279 = vmatprep.mubr.msk.bf16.mxu0 %vm147_vm1, %v4157_v35  ;;  %v4618_v36 = vsel %vm816_vm3, %v2228_v45, %v2229_v53  ;;  %v4623_v11 = vsel %vm816_vm3, %v2229_v53, %v2231_v9 }
  0x8e   :  { %3128 = vmatmul.mubr.msk.bf16.gmra.mrb[4].mxu1 %vm147_vm1, %v4173_v43  ;;  %v2235_v5 = vpack.c.bf16 %v4623_v11, %v4618_v36 }
  0x8f   :  { %3131 = vmatprep.mubr.msk.bf16.mxu1 %vm147_vm1, %v4214_v49 }
  0x94   :  { %3280 = vmatmul.mubr.msk.bf16.gmra.mrb[20].mxu0 %vm147_vm1, %v4196_v42 }
  0x95   :  { %3283 = vmatprep.mubr.msk.bf16.mxu0 %vm147_vm1, %v4209_v55 }
  0x96   :  { %3132 = vmatmul.mubr.msk.bf16.gmra.mrb[8].mxu1 %vm147_vm1, %v4216_v57 }
  0x97   :  { %3135 = vmatprep.mubr.msk.bf16.mxu1 %vm147_vm1, %v4259_v51 }
  0x9c   :  { %3284 = vmatmul.mubr.msk.bf16.gmra.mrb[24].mxu0 %vm147_vm1, %v4249_v21 }
  0x9d   :  { %3287 = vmatprep.mubr.msk.bf16.mxu0 %vm147_vm1, %v4422_v8 }
  0x9e   :  { %3136 = vmatmul.mubr.msk.bf16.gmra.mrb[12].mxu1 %vm147_vm1, %v4261_v39 }
  0x9f   :  { %3139 = vmatprep.mubr.msk.bf16.mxu1 %vm147_vm1, %v4304_v14 }
  0xa4   :  { %3288 = vmatmul.mubr.msk.bf16.gmra.mrb[28].mxu0 %vm147_vm1, %v66_v2 }
  0xa5   :  { %3293 = vmatprep.mubr.msk.bf16.mxu0 %vm147_vm1, %v3943_v34  ;;  %v5101_v34 = vld [vmem:[#allocation8_spill] sm:$0xff] }
  0xa6   :  { %3140 = vmatmul.mubr.msk.bf16.gmra.mrb[16].mxu1 %vm147_vm1, %v4310_v52 }
  0xa7   :  { %3143 = vmatprep.mubr.msk.bf16.mxu1 %vm147_vm1, %v4365_v25 }
  0xac   :  { %3294 = vmatmul.mubr.msk.bf16.vlgmr.msra.gmra.mrb[0].mxu0 %vm147_vm1, %v4011_v59  ;;  %v5103_v59 = vld [vmem:[#allocation9_spill] sm:$0xff] }
  0xad   :  { %3326 = vmatpush3.bf16.msra.mxu0 %v2242_v62  ;;  %3297 = vmatprep.mubr.msk.bf16.mxu0 %vm147_vm1, %v5098_v40 }
  0xae   :  { %3144 = vmatmul.mubr.msk.bf16.gmra.mrb[20].mxu1 %vm147_vm1, %v4371_v0 }
  0xaf   :  { %3147 = vmatprep.mubr.msk.bf16.mxu1 %vm147_vm1, %v5099_v1 }
  0xb4   :  { %3298 = vmatmul.mubr.msk.bf16.gmra.mrb[4].mxu0 %vm147_vm1, %v5100_v58 }
  0xb5   :  { %3301 = vmatprep.mubr.msk.bf16.mxu0 %vm147_vm1, %v5102_v30 }
  0xb6   :  { %3148 = vmatmul.mubr.msk.bf16.gmra.mrb[24].mxu1 %vm147_vm1, %v5101_v34 }
  0xb7   :  { %3151 = vmatprep.mubr.msk.bf16.mxu1 %vm147_vm1, %v4447_v31 }
  0xbc   :  { %3302 = vmatmul.mubr.msk.bf16.gmra.mrb[8].mxu0 %vm147_vm1, %v4093_v23 }
  0xbd   :  { %3305 = vmatprep.mubr.msk.bf16.mxu0 %vm147_vm1, %v4123_v50 }
  0xbe   :  { %3152 = vmatmul.mubr.msk.bf16.gmra.mrb[28].mxu1 %vm147_vm1, %v5103_v59 }
  0xbf   :  { %3157 = vmatprep.mubr.msk.bf16.mxu1 %vm147_vm1, %v5104_v56 }
  0xc4   :  { %3306 = vmatmul.mubr.msk.bf16.gmra.mrb[12].mxu0 %vm147_vm1, %v4483_v22 }
  0xc5   :  { %3309 = vmatprep.mubr.msk.bf16.mxu0 %vm147_vm1, %v4489_v33 }
  0xc6   :  { %3158 = vmatmul.mubr.msk.bf16.vlgmr.msra.gmra.mrb[0].mxu1 %vm147_vm1, %v3884_v10  ;;  %v2019_v10 = vrot.slane %v120_v20, 1 }
  0xc7   :  { %3360 = vmatpush3.bf16.msra.mxu1 %v5105_v12  ;;  %3161 = vmatprep.mubr.msk.bf16.mxu1 %vm147_vm1, %v3919_v24  ;;  %v2020_v24 = vrot.slane %v121_v16, 1 }
  0xcc   :  { %3310 = vmatmul.mubr.msk.bf16.gmra.mrb[16].mxu0 %vm147_vm1, %v4513_v28 }
  0xcd   :  { %3313 = vmatprep.mubr.msk.bf16.mxu0 %vm147_vm1, %v4519_v19 }
  0xce   :  { %3162 = vmatmul.mubr.msk.bf16.gmra.mrb[4].mxu1 %vm147_vm1, %v3932_v29  ;;  %v2022_v29 = vrot.slane %v122_v26, 1 }
  0xcf   :  { %3165 = vmatprep.mubr.msk.bf16.mxu1 %vm147_vm1, %v3958_v41  ;;  %v2021_v41 = vsel %vm441_vm2, %v2019_v10, %v2020_v24 }
  0xd4   :  { %3314 = vmatmul.mubr.msk.bf16.gmra.mrb[20].mxu0 %vm147_vm1, %v4545_v44 }
  0xd5   :  { %3317 = vmatprep.mubr.msk.bf16.mxu0 %vm147_vm1, %v4551_v6 }
  0xd6   :  { %3166 = vmatmul.mubr.msk.bf16.gmra.mrb[8].mxu1 %vm147_vm1, %v3997_v54  ;;  %v2023_v54 = vsel %vm441_vm2, %v2020_v24, %v2022_v29 }
  0xd7   :  { %3169 = vmatprep.mubr.msk.bf16.mxu1 %vm147_vm1, %v4024_v63  ;;  %v2026_v63 = vpack.c.bf16 %v2023_v54, %v2021_v41 }
  0xdc   :  { %3318 = vmatmul.mubr.msk.bf16.gmra.mrb[24].mxu0 %vm147_vm1, %v4565_v61 }
  0xdd   :  { %3321 = vmatprep.mubr.msk.bf16.mxu0 %vm147_vm1, %v4481_v4 }
  0xde   :  { %3170 = vmatmul.mubr.msk.bf16.gmra.mrb[12].mxu1 %vm147_vm1, %v4054_v27 }
  0xdf   :  { %3173 = vmatprep.mubr.msk.bf16.mxu1 %vm147_vm1, %v4112_v32 }
  0xe4   :  { %3322 = vmatmul.mubr.msk.bf16.gmra.mrb[28].mxu0 %vm147_vm1, %v2026_v63 }
  0xe5   :  { %3327 = vmatprep.mubr.msk.bf16.mxu0 %vm147_vm1, %v4163_v13 }
  0xe6   :  { %3174 = vmatmul.mubr.msk.bf16.gmra.mrb[16].mxu1 %vm147_vm1, %v4119_v47 }
  0xe7   :  { %3177 = vmatprep.mubr.msk.bf16.mxu1 %vm147_vm1, %v4150_v17 }
  0xec   :  { %3328 = vmatmul.mubr.msk.bf16.vlgmr.msra.gmra.mrb[0].mxu0 %vm147_vm1, %v4173_v43 }
  0xed   :  { %3331 = vmatprep.mubr.msk.bf16.mxu0 %vm147_vm1, %v4214_v49 }
  0xee   :  { %3178 = vmatmul.mubr.msk.bf16.gmra.mrb[20].mxu1 %vm147_vm1, %v4157_v35 }
  0xef   :  { %3181 = vmatprep.mubr.msk.bf16.mxu1 %vm147_vm1, %v4196_v42 }
  0xf4   :  { %3332 = vmatmul.mubr.msk.bf16.gmra.mrb[4].mxu0 %vm147_vm1, %v4216_v57 }
  0xf5   :  { %3335 = vmatprep.mubr.msk.bf16.mxu0 %vm147_vm1, %v4259_v51 }
  0xf6   :  { %3182 = vmatmul.mubr.msk.bf16.gmra.mrb[24].mxu1 %vm147_vm1, %v4209_v55 }
  0xf7   :  { %3185 = vmatprep.mubr.msk.bf16.mxu1 %vm147_vm1, %v4249_v21 }
  0xfc   :  { %3336 = vmatmul.mubr.msk.bf16.gmra.mrb[8].mxu0 %vm147_vm1, %v4261_v39  ;;  %v4770_v39 = vld [vmem:[%s5034_s2] ss:$0 sm:$0xff] }
  0xfd   :  { %3339 = vmatprep.mubr.msk.bf16.mxu0 %vm147_vm1, %v4304_v14 }
  0xfe   :  { %3186 = vmatmul.mubr.msk.bf16.gmra.mrb[28].mxu1 %vm147_vm1, %v4422_v8 }
  0xff   :  { %3207 = vmatprep.mubr.msk.bf16.mxu1 %vm147_vm1, %v4483_v22 }
 0x104   :  { %3340 = vmatmul.mubr.msk.bf16.gmra.mrb[12].mxu0 %vm147_vm1, %v4310_v52 }
 0x105   :  { %3343 = vmatprep.mubr.msk.bf16.mxu0 %vm147_vm1, %v4365_v25 }
 0x106   :  { %3208 = vmatmul.mubr.msk.bf16.vlgmr.msra.gmra.mrb[16].mxu1 %vm147_vm1, %v4489_v33 }
 0x107   :  { %3211 = vmatprep.mubr.msk.bf16.mxu1 %vm147_vm1, %v4513_v28 }
 0x10c   :  { %3344 = vmatmul.mubr.msk.bf16.gmra.mrb[16].mxu0 %vm147_vm1, %v4371_v0 }
 0x10d   :  { %3347 = vmatprep.mubr.msk.bf16.mxu0 %vm147_vm1, %v5099_v1 }
 0x10e   :  { %3212 = vmatmul.mubr.msk.bf16.gmra.mrb[20].mxu1 %vm147_vm1, %v4519_v19 }
 0x10f   :  { %3215 = vmatprep.mubr.msk.bf16.mxu1 %vm147_vm1, %v4545_v44 }
 0x114   :  { %3348 = vmatmul.mubr.msk.bf16.gmra.mrb[20].mxu0 %vm147_vm1, %v5101_v34 }
 0x115   :  { %3351 = vmatprep.mubr.msk.bf16.mxu0 %vm147_vm1, %v4447_v31 }
 0x116   :  { %3216 = vmatmul.mubr.msk.bf16.gmra.mrb[24].mxu1 %vm147_vm1, %v4551_v6 }
 0x117   :  { %3219 = vmatprep.mubr.msk.bf16.mxu1 %vm147_vm1, %v4565_v61 }
 0x11c   :  { %3352 = vmatmul.mubr.msk.bf16.gmra.mrb[24].mxu0 %vm147_vm1, %v5103_v59 }
 0x11d   :  { %3355 = vmatprep.mubr.msk.bf16.mxu0 %vm147_vm1, %v4479_v46 }
 0x11e   :  { %3220 = vmatmul.mubr.msk.bf16.gmra.mrb[28].mxu1 %vm147_vm1, %v4481_v4 }
 0x124   :  { %3356 = vmatmul.mubr.msk.bf16.gmra.mrb[28].mxu0 %vm147_vm1, %v2235_v5 }
 0x199   :  { %v3159_v27 = vpop.f32.mrb[0].mxu1 }
 0x19a   :  { %v1234_v23 = vpop.f32.mrb[1].mxu1  ;;  %v3361_v14 = vadd.f32 %v3159_v27, %v4770_v39 }
 0x19b   :  { %v3160_v32 = vpop.f32.mrb[2].mxu1  ;;  %v3363_v52 = vadd.f32 %v4770_v39, %v1234_v23 }
 0x19c   :  { %v1237_v47 = vpop.f32.mrb[3].mxu1  ;;  %v3365_v0 = vadd.f32 %v3160_v32, %v4770_v39 }
 0x19d   :  { %v3367_v4 = vadd.f32 %v4770_v39, %v1237_v47 }
 0x1a1   :  { %v3163_v50 = vpop.f32.mrb[4].mxu1 }
 0x1a2   :  { %v1250_v17 = vpop.f32.mrb[5].mxu1  ;;  %v3369_v3 = vadd.f32 %v3163_v50, %v4770_v39 }
 0x1a3   :  { %v3164_v35 = vpop.f32.mrb[6].mxu1  ;;  %v3371_v15 = vadd.f32 %v4770_v39, %v1250_v17 }
 0x1a4   :  { %v1253_v13 = vpop.f32.mrb[7].mxu1  ;;  %v3373_v48 = vadd.f32 %v3164_v35, %v4770_v39 }
 0x1a5   :  { %v3375_v20 = vadd.f32 %v4770_v39, %v1253_v13 }
 0x1a9   :  { %v3167_v43 = vpop.f32.mrb[8].mxu1 }
 0x1aa   :  { %v1266_v42 = vpop.f32.mrb[9].mxu1  ;;  %v3377_v40 = vadd.f32 %v3167_v43, %v4770_v39 }
 0x1ab   :  { %v3168_v55 = vpop.f32.mrb[10].mxu1  ;;  %v3379_v58 = vadd.f32 %v4770_v39, %v1266_v42 }
 0x1ac   :  { %v1269_v49 = vpop.f32.mrb[11].mxu1  ;;  %v3381_v56 = vadd.f32 %v3168_v55, %v4770_v39 }
 0x1ad   :  { %v3383_v41 = vadd.f32 %v4770_v39, %v1269_v49 }
 0x1b1   :  { %v4759_v57 = vpop.f32.mrb[12].mxu1 }
 0x1b2   :  { %v4761_v46 = vpop.f32.mrb[13].mxu1  ;;  %v3385_v55 = vadd.f32 %v4759_v57, %v4770_v39 }
 0x1b3   :  { %v4763_v21 = vpop.f32.mrb[14].mxu1 }
 0x1b4   :  { %v4765_v51 = vpop.f32.mrb[15].mxu1 }
 0x1b5   :  { %v3391_v57 = vadd.f32 %v4770_v39, %v4765_v51 }
 0x1bf   :  { %v3329_v25 = vpop.f32.mrb[0].mxu0 }
 0x1c0   :  { %v4775_v31 = vadd.f32 %v3361_v14, %v3329_v25  ;;  %v2278_v8 = vpop.f32.mrb[1].mxu0  ;;  %v3387_v14 = vadd.f32 %v4770_v39, %v4761_v46 }
 0x1c1   :  { %v4778_v22 = vadd.f32 %v3363_v52, %v2278_v8  ;;  %v3330_v33 = vpop.f32.mrb[2].mxu0  ;;  %v3389_v8 = vadd.f32 %v4763_v21, %v4770_v39 }
 0x1c2   :  { %v2870_v28 = vmul.f32 -1.442695, %v4775_v31  ;;  %v4781_v19 = vadd.f32 %v3365_v0, %v3330_v33  ;;  %v2281_v44 = vpop.f32.mrb[3].mxu0 }
 0x1c3   :  { %v2868_v18 = vmul.f32 -1.442695, %v4778_v22  ;;  %v4784_v6 = vadd.f32 %v3367_v4, %v2281_v44 }
 0x1c4   :  { %3695 = vpow2.f32 %v2870_v28  ;;  %v2871_v7 = vmul.f32 -1.442695, %v4781_v19 }
 0x1c5   :  { %3697 = vpow2.f32 %v2868_v18  ;;  %v2869_v37 = vmul.f32 -1.442695, %v4784_v6 }
 0x1c6   :  { %3699 = vpow2.f32 %v2871_v7 }
 0x1c7   :  { %3701 = vpow2.f32 %v2869_v37  ;;  %v3333_v61 = vpop.f32.mrb[4].mxu0 }
 0x1c8   :  { %v4791_v60 = vadd.f32 %v3369_v3, %v3333_v61  ;;  %v2294_v2 = vpop.f32.mrb[5].mxu0 }
 0x1c9   :  { %v4794_v16 = vadd.f32 %v3371_v15, %v2294_v2  ;;  %v3334_v38 = vpop.f32.mrb[6].mxu0 }
 0x1ca   :  { %v2874_v45 = vmul.f32 -1.442695, %v4791_v60  ;;  %v4797_v53 = vadd.f32 %v3373_v48, %v3334_v38  ;;  %v2297_v26 = vpop.f32.mrb[7].mxu0 }
 0x1cb   :  { %v2872_v36 = vmul.f32 -1.442695, %v4794_v16  ;;  %v4800_v9 = vadd.f32 %v3375_v20, %v2297_v26 }
 0x1cc   :  { %3703 = vpow2.f32 %v2874_v45  ;;  %v2875_v11 = vmul.f32 -1.442695, %v4797_v53 }
 0x1cd   :  { %3705 = vpow2.f32 %v2872_v36  ;;  %v2873_v5 = vmul.f32 -1.442695, %v4800_v9 }
 0x1ce   :  { %v3696_v62 = vpop.eup %3695  ;;  %3707 = vpow2.f32 %v2875_v11 }
 0x1cf   :  { %v3698_v1 = vpop.eup %3697  ;;  %v2535_v34 = vadd.f32 1.0, %v3696_v62  ;;  %3709 = vpow2.f32 %v2873_v5  ;;  %v3337_v30 = vpop.f32.mrb[8].mxu0 }
 0x1d0   :  { %v3700_v59 = vpop.eup %3699  ;;  %v2533_v12 = vadd.f32 1.0, %v3698_v1  ;;  %v4807_v10 = vadd.f32 %v3377_v40, %v3337_v30  ;;  %v2310_v24 = vpop.f32.mrb[9].mxu0 }
 0x1d1   :  { %v3702_v29 = vpop.eup %3701  ;;  %3711 = vrcp.f32 %v2535_v34  ;;  %v2536_v54 = vadd.f32 1.0, %v3700_v59  ;;  %v4810_v63 = vadd.f32 %v3379_v58, %v2310_v24  ;;  %v3338_v27 = vpop.f32.mrb[10].mxu0 }
 0x1d2   :  { %3713 = vrcp.f32 %v2533_v12  ;;  %v2534_v23 = vadd.f32 1.0, %v3702_v29  ;;  %v2878_v32 = vmul.f32 -1.442695, %v4807_v10  ;;  %v4813_v47 = vadd.f32 %v3381_v56, %v3338_v27  ;;  %v2313_v50 = vpop.f32.mrb[11].mxu0 }
 0x1d3   :  { %3715 = vrcp.f32 %v2536_v54  ;;  %v2876_v17 = vmul.f32 -1.442695, %v4810_v63  ;;  %v4816_v35 = vadd.f32 %v3383_v41, %v2313_v50 }
 0x1d4   :  { %3717 = vrcp.f32 %v2534_v23  ;;  %v2879_v13 = vmul.f32 -1.442695, %v4813_v47 }
 0x1d5   :  { %3719 = vpow2.f32 %v2878_v32  ;;  %v2877_v43 = vmul.f32 -1.442695, %v4816_v35 }
 0x1d6   :  { %v3704_v42 = vpop.eup %3703  ;;  %3721 = vpow2.f32 %v2876_v17 }
 0x1d7   :  { %v3706_v49 = vpop.eup %3705  ;;  %v2539_v52 = vadd.f32 1.0, %v3704_v42  ;;  %3723 = vpow2.f32 %v2879_v13  ;;  %v3341_v25 = vpop.f32.mrb[12].mxu0 }
 0x1d8   :  { %v3708_v0 = vpop.eup %3707  ;;  %v2537_v4 = vadd.f32 1.0, %v3706_v49  ;;  %3725 = vpow2.f32 %v2877_v43  ;;  %v4826_v33 = vadd.f32 %v3385_v55, %v3341_v25  ;;  %v2326_v28 = vpop.f32.mrb[13].mxu0 }
 0x1d9   :  { %v3209_v44 = vpop.f32.mrb[16].mxu1  ;;  %v3710_v18 = vpop.eup %3709  ;;  %3727 = vrcp.f32 %v2539_v52  ;;  %v2540_v7 = vadd.f32 1.0, %v3708_v0  ;;  %v4830_v46 = vadd.f32 %v3387_v14, %v2326_v28 }
 0x1da   :  { %v3342_v37 = vpop.f32.mrb[14].mxu0  ;;  %v1510_v3 = vpop.f32.mrb[17].mxu1  ;;  %3729 = vrcp.f32 %v2537_v4  ;;  %v2538_v15 = vadd.f32 1.0, %v3710_v18  ;;  %v2882_v21 = vmul.f32 -1.442695, %v4826_v33  ;;  %v3393_v34 = vadd.f32 %v3209_v44, %v4770_v39 }
 0x1db   :  { %v4833_v61 = vadd.f32 %v3389_v8, %v3342_v37  ;;  %v2329_v48 = vpop.f32.mrb[15].mxu0  ;;  %v3210_v2 = vpop.f32.mrb[18].mxu1  ;;  %3731 = vrcp.f32 %v2540_v7  ;;  %v2880_v38 = vmul.f32 -1.442695, %v4830_v46  ;;  %v3395_v30 = vadd.f32 %v4770_v39, %v1510_v3 }
 0x1dc   :  { %v3712_v20 = vpop.eup %3711  ;;  %v4836_v45 = vadd.f32 %v3391_v57, %v2329_v48  ;;  %v1513_v51 = vpop.f32.mrb[19].mxu1  ;;  %3733 = vrcp.f32 %v2538_v15  ;;  %v3397_v12 = vadd.f32 %v3210_v2, %v4770_v39 }
 0x1dd   :  { %v3714_v26 = vpop.eup %3713  ;;  %v2631_v36 = vmul.f32 %v3712_v20, %v4775_v31  ;;  %v2883_v11 = vmul.f32 -1.442695, %v4833_v61  ;;  %3735 = vpow2.f32 %v2882_v21  ;;  %v3399_v27 = vadd.f32 %v4770_v39, %v1513_v51 }
 0x1de   :  { %v3716_v5 = vpop.eup %3715  ;;  %v2629_v62 = vmul.f32 %v3714_v26, %v4778_v22  ;;  %v2881_v40 = vmul.f32 -1.442695, %v4836_v45  ;;  %3737 = vpow2.f32 %v2880_v38 }
 0x1df   :  { %v3718_v1 = vpop.eup %3717  ;;  %2663 = vst [vmem:[%s5035_s3 + $0x10] sm:$0xff] %v2631_v36  ;;  %v2632_v58 = vmul.f32 %v3716_v5, %v4781_v19  ;;  %3739 = vpow2.f32 %v2883_v11  ;;  %v3345_v59 = vpop.f32.mrb[16].mxu0 }
 0x1e0   :  { %v3720_v31 = vpop.eup %3719  ;;  %2661 = vst [vmem:[%s5035_s3] sm:$0xff] %v2629_v62  ;;  %v2630_v22 = vmul.f32 %v3718_v1, %v4784_v6  ;;  %3741 = vpow2.f32 %v2881_v40  ;;  %v4856_v24 = vadd.f32 %v3393_v34, %v3345_v59  ;;  %v2342_v29 = vpop.f32.mrb[17].mxu0 }
 0x1e1   :  { %v3722_v56 = vpop.eup %3721  ;;  %2664 = vst [vmem:[%s5035_s3 + $0x18] sm:$0xff] %v2632_v58  ;;  %v2543_v19 = vadd.f32 1.0, %v3720_v31  ;;  %v3213_v41 = vpop.f32.mrb[20].mxu1  ;;  %v4862_v23 = vadd.f32 %v3395_v30, %v2342_v29 }
 0x1e2   :  { %v3724_v54 = vpop.eup %3723  ;;  %2662 = vst [vmem:[%s5035_s3 + $0x8] sm:$0xff] %v2630_v22  ;;  %v2541_v6 = vadd.f32 1.0, %v3722_v56  ;;  %v3346_v32 = vpop.f32.mrb[18].mxu0  ;;  %v2886_v43 = vmul.f32 -1.442695, %v4856_v24  ;;  %v3401_v15 = vadd.f32 %v3213_v41, %v4770_v39 }
 0x1e3   :  { %v1526_v50 = vpop.f32.mrb[21].mxu1  ;;  %v3726_v17 = vpop.eup %3725  ;;  %3743 = vrcp.f32 %v2543_v19  ;;  %v2544_v13 = vadd.f32 1.0, %v3724_v54  ;;  %v4865_v42 = vadd.f32 %v3397_v12, %v3346_v32  ;;  %v2884_v25 = vmul.f32 -1.442695, %v4862_v23 }
 0x1e4   :  { %v2345_v55 = vpop.f32.mrb[19].mxu0  ;;  %v3214_v49 = vpop.f32.mrb[22].mxu1  ;;  %3745 = vrcp.f32 %v2541_v6  ;;  %v2542_v52 = vadd.f32 1.0, %v3726_v17  ;;  %v3403_v21 = vadd.f32 %v4770_v39, %v1526_v50 }
 0x1e5   :  { %v3728_v14 = vpop.eup %3727  ;;  %v4868_v0 = vadd.f32 %v3399_v27, %v2345_v55  ;;  %v1529_v8 = vpop.f32.mrb[23].mxu1  ;;  %3747 = vrcp.f32 %v2544_v13  ;;  %v2887_v44 = vmul.f32 -1.442695, %v4865_v42  ;;  %v3405_v20 = vadd.f32 %v3214_v49, %v4770_v39 }
 0x1e6   :  { %v3730_v4 = vpop.eup %3729  ;;  %v2635_v28 = vmul.f32 %v3728_v14, %v4791_v60  ;;  %3749 = vrcp.f32 %v2542_v52  ;;  %v3407_v11 = vadd.f32 %v4770_v39, %v1529_v8 }
 0x1e7   :  { %v3732_v18 = vpop.eup %3731  ;;  %v2633_v57 = vmul.f32 %v3730_v4, %v4794_v16  ;;  %v2885_v7 = vmul.f32 -1.442695, %v4868_v0  ;;  %3751 = vpow2.f32 %v2886_v43  ;;  %v3349_v48 = vpop.f32.mrb[20].mxu0 }
 0x1e8   :  { %v3734_v37 = vpop.eup %3733  ;;  %2667 = vst [vmem:[%s5035_s3 + $0x30] sm:$0xff] %v2635_v28  ;;  %v2636_v3 = vmul.f32 %v3732_v18, %v4797_v53  ;;  %3753 = vpow2.f32 %v2884_v25  ;;  %v4888_v38 = vadd.f32 %v3401_v15, %v3349_v48  ;;  %v2358_v51 = vpop.f32.mrb[21].mxu0 }
 0x1e9   :  { %v3736_v60 = vpop.eup %3735  ;;  %2665 = vst [vmem:[%s5035_s3 + $0x20] sm:$0xff] %v2633_v57  ;;  %v2634_v16 = vmul.f32 %v3734_v37, %v4800_v9  ;;  %3755 = vpow2.f32 %v2887_v44  ;;  %v3217_v26 = vpop.f32.mrb[24].mxu1  ;;  %v4894_v5 = vadd.f32 %v3403_v21, %v2358_v51 }
 0x1ea   :  { %v3738_v2 = vpop.eup %3737  ;;  %2668 = vst [vmem:[%s5035_s3 + $0x38] sm:$0xff] %v2636_v3  ;;  %v2547_v53 = vadd.f32 1.0, %v3736_v60  ;;  %3757 = vpow2.f32 %v2885_v7  ;;  %v3350_v62 = vpop.f32.mrb[22].mxu0  ;;  %v2890_v34 = vmul.f32 -1.442695, %v4888_v38  ;;  %v3409_v17 = vadd.f32 %v3217_v26, %v4770_v39 }
 0x1eb   :  { %v3740_v36 = vpop.eup %3739  ;;  %2666 = vst [vmem:[%s5035_s3 + $0x28] sm:$0xff] %v2634_v16  ;;  %v2545_v9 = vadd.f32 1.0, %v3738_v2  ;;  %v1542_v40 = vpop.f32.mrb[25].mxu1  ;;  %v4897_v31 = vadd.f32 %v3405_v20, %v3350_v62  ;;  %v2888_v56 = vmul.f32 -1.442695, %v4894_v5 }
 0x1ec   :  { %v3742_v1 = vpop.eup %3741  ;;  %3759 = vrcp.f32 %v2547_v53  ;;  %v2548_v58 = vadd.f32 1.0, %v3740_v36  ;;  %v2361_v22 = vpop.f32.mrb[23].mxu0  ;;  %v3411_v55 = vadd.f32 %v4770_v39, %v1542_v40 }
 0x1ed   :  { %v3218_v30 = vpop.f32.mrb[26].mxu1  ;;  %3761 = vrcp.f32 %v2545_v9  ;;  %v2546_v59 = vadd.f32 1.0, %v3742_v1  ;;  %v4900_v19 = vadd.f32 %v3407_v11, %v2361_v22  ;;  %v3744_v29 = vpop.eup %3743  ;;  %v2891_v41 = vmul.f32 -1.442695, %v4897_v31 }
 0x1ee   :  { %v1545_v12 = vpop.f32.mrb[27].mxu1  ;;  %3763 = vrcp.f32 %v2548_v58  ;;  %v3746_v54 = vpop.eup %3745  ;;  %v2639_v6 = vmul.f32 %v3744_v29, %v4807_v10  ;;  %v3413_v14 = vadd.f32 %v3218_v30, %v4770_v39 }
 0x1ef   :  { %3765 = vrcp.f32 %v2546_v59  ;;  %v2889_v27 = vmul.f32 -1.442695, %v4900_v19  ;;  %v3748_v32 = vpop.eup %3747  ;;  %v2637_v50 = vmul.f32 %v3746_v54, %v4810_v63  ;;  %v3353_v10 = vpop.f32.mrb[24].mxu0  ;;  %v3415_v28 = vadd.f32 %v4770_v39, %v1545_v12 }
 0x1f0   :  { %3767 = vpow2.f32 %v2890_v34  ;;  %v3750_v13 = vpop.eup %3749  ;;  %2671 = vst [vmem:[%s5035_s3 + $0x50] sm:$0xff] %v2639_v6  ;;  %v2640_v43 = vmul.f32 %v3748_v32, %v4813_v47  ;;  %v4917_v52 = vadd.f32 %v3409_v17, %v3353_v10  ;;  %v2374_v25 = vpop.f32.mrb[25].mxu0 }
 0x1f1   :  { %3769 = vpow2.f32 %v2888_v56  ;;  %v3752_v49 = vpop.eup %3751  ;;  %2669 = vst [vmem:[%s5035_s3 + $0x40] sm:$0xff] %v2637_v50  ;;  %v2638_v63 = vmul.f32 %v3750_v13, %v4816_v35  ;;  %v3221_v8 = vpop.f32.mrb[28].mxu1  ;;  %v4923_v44 = vadd.f32 %v3411_v55, %v2374_v25 }
 0x1f2   :  { %3771 = vpow2.f32 %v2891_v41  ;;  %v3754_v4 = vpop.eup %3753  ;;  %2672 = vst [vmem:[%s5035_s3 + $0x58] sm:$0xff] %v2640_v43  ;;  %v2551_v47 = vadd.f32 1.0, %v3752_v49  ;;  %v3354_v18 = vpop.f32.mrb[26].mxu0  ;;  %v2894_v21 = vmul.f32 -1.442695, %v4917_v52  ;;  %v3417_v1 = vadd.f32 %v3221_v8, %v4770_v39 }
 0x1f3   :  { %3773 = vpow2.f32 %v2889_v27  ;;  %v1558_v35 = vpop.f32.mrb[29].mxu1  ;;  %v3756_v57 = vpop.eup %3755  ;;  %2670 = vst [vmem:[%s5035_s3 + $0x48] sm:$0xff] %v2638_v63  ;;  %v2549_v7 = vadd.f32 1.0, %v3754_v4  ;;  %v4928_v37 = vadd.f32 %v3413_v14, %v3354_v18  ;;  %v2892_v51 = vmul.f32 -1.442695, %v4923_v44 }
 0x1f4   :  { %v2377_v3 = vpop.f32.mrb[27].mxu0  ;;  %v3222_v15 = vpop.f32.mrb[30].mxu1  ;;  %3775 = vrcp.f32 %v2551_v47  ;;  %v2552_v16 = vadd.f32 1.0, %v3756_v57 }
 0x1f5   :  { %v3758_v60 = vpop.eup %3757  ;;  %v4931_v48 = vadd.f32 %v3415_v28, %v2377_v3  ;;  %v1561_v2 = vpop.f32.mrb[31].mxu1  ;;  %3777 = vrcp.f32 %v2549_v7  ;;  %v2895_v9 = vmul.f32 -1.442695, %v4928_v37  ;;  %v3421_v59 = vadd.f32 %v3222_v15, %v4770_v39 }
 0x1f6   :  { %v3760_v53 = vpop.eup %3759  ;;  %v2550_v20 = vadd.f32 1.0, %v3758_v60  ;;  %3779 = vrcp.f32 %v2552_v16  ;;  %v3423_v41 = vadd.f32 %v4770_v39, %v1561_v2 }
 0x1f7   :  { %v3762_v26 = vpop.eup %3761  ;;  %v2643_v36 = vmul.f32 %v3760_v53, %v4826_v33  ;;  %v2893_v40 = vmul.f32 -1.442695, %v4931_v48  ;;  %v3419_v33 = vadd.f32 %v4770_v39, %v1558_v35  ;;  %v3357_v22 = vpop.f32.mrb[28].mxu0 }
 0x1f8   :  { %v3764_v11 = vpop.eup %3763  ;;  %v2641_v62 = vmul.f32 %v3762_v26, %v4830_v46  ;;  %3781 = vrcp.f32 %v2550_v20  ;;  %v4949_v56 = vadd.f32 %v3417_v1, %v3357_v22  ;;  %v2390_v12 = vpop.f32.mrb[29].mxu0 }
 0x1f9   :  { %v3766_v58 = vpop.eup %3765  ;;  %2675 = vst [vmem:[%s5035_s3 + $0x70] sm:$0xff] %v2643_v36  ;;  %v2644_v34 = vmul.f32 %v3764_v11, %v4833_v61  ;;  %3783 = vpow2.f32 %v2894_v21  ;;  %v4955_v54 = vadd.f32 %v3419_v33, %v2390_v12  ;;  %v3358_v6 = vpop.f32.mrb[30].mxu0 }
 0x1fa   :  { %v3768_v30 = vpop.eup %3767  ;;  %2673 = vst [vmem:[%s5035_s3 + $0x60] sm:$0xff] %v2641_v62  ;;  %v2642_v46 = vmul.f32 %v3766_v58, %v4836_v45  ;;  %3785 = vpow2.f32 %v2892_v51  ;;  %v4960_v32 = vadd.f32 %v3421_v59, %v3358_v6  ;;  %v2393_v50 = vpop.f32.mrb[31].mxu0  ;;  %v2898_v43 = vmul.f32 -1.442695, %v4949_v56 }
 0x1fb   :  { %v3770_v29 = vpop.eup %3769  ;;  %2676 = vst [vmem:[%s5035_s3 + $0x78] sm:$0xff] %v2644_v34  ;;  %v2555_v61 = vadd.f32 1.0, %v3768_v30  ;;  %3787 = vpow2.f32 %v2895_v9  ;;  %v4963_v55 = vadd.f32 %v3423_v41, %v2393_v50  ;;  %v2896_v10 = vmul.f32 -1.442695, %v4955_v54 }
 0x1fc   :  { %v3772_v27 = vpop.eup %3771  ;;  %2674 = vst [vmem:[%s5035_s3 + $0x68] sm:$0xff] %v2642_v46  ;;  %v2553_v45 = vadd.f32 1.0, %v3770_v29  ;;  %3789 = vpow2.f32 %v2893_v40  ;;  %v2899_v63 = vmul.f32 -1.442695, %v4960_v32 }
 0x1fd   :  { %v3774_v17 = vpop.eup %3773  ;;  %3791 = vrcp.f32 %v2555_v61  ;;  %v2556_v13 = vadd.f32 1.0, %v3772_v27  ;;  %v2897_v8 = vmul.f32 -1.442695, %v4963_v55 }
 0x1fe   :  { %3793 = vrcp.f32 %v2553_v45  ;;  %v2554_v39 = vadd.f32 1.0, %v3774_v17  ;;  %v3776_v49 = vpop.eup %3775 }
 0x1ff   :  { %3795 = vrcp.f32 %v2556_v13  ;;  %v3778_v14 = vpop.eup %3777  ;;  %v2647_v25 = vmul.f32 %v3776_v49, %v4856_v24 }
 0x200   :  { %3797 = vrcp.f32 %v2554_v39  ;;  %v3780_v4 = vpop.eup %3779  ;;  %v2645_v47 = vmul.f32 %v3778_v14, %v4862_v23 }
 0x201   :  { %3799 = vpow2.f32 %v2898_v43  ;;  %2679 = vst [vmem:[%s5035_s3 + $0x90] sm:$0xff] %v2647_v25  ;;  %v2648_v18 = vmul.f32 %v3780_v4, %v4865_v42 }
 0x202   :  { %v3782_v28 = vpop.eup %3781  ;;  %3801 = vpow2.f32 %v2896_v10  ;;  %2677 = vst [vmem:[%s5035_s3 + $0x80] sm:$0xff] %v2645_v47 }
 0x203   :  { %v3784_v35 = vpop.eup %3783  ;;  %v2646_v24 = vmul.f32 %v3782_v28, %v4868_v0  ;;  %3803 = vpow2.f32 %v2899_v63  ;;  %2680 = vst [vmem:[%s5035_s3 + $0x98] sm:$0xff] %v2648_v18 }
 0x204   :  { %v3786_v57 = vpop.eup %3785  ;;  %v2559_v23 = vadd.f32 1.0, %v3784_v35  ;;  %3805 = vpow2.f32 %v2897_v8 }
 0x205   :  { %v3788_v7 = vpop.eup %3787  ;;  %2678 = vst [vmem:[%s5035_s3 + $0x88] sm:$0xff] %v2646_v24  ;;  %v2557_v42 = vadd.f32 1.0, %v3786_v57 }
 0x206   :  { %v3790_v3 = vpop.eup %3789  ;;  %3807 = vrcp.f32 %v2559_v23  ;;  %v2560_v15 = vadd.f32 1.0, %v3788_v7 }
 0x207   :  { %v3792_v60 = vpop.eup %3791  ;;  %3809 = vrcp.f32 %v2557_v42  ;;  %v2558_v0 = vadd.f32 1.0, %v3790_v3 }
 0x208   :  { %v3794_v16 = vpop.eup %3793  ;;  %v2651_v21 = vmul.f32 %v3792_v60, %v4888_v38  ;;  %3811 = vrcp.f32 %v2560_v15 }
 0x209   :  { %v3796_v2 = vpop.eup %3795  ;;  %v2649_v53 = vmul.f32 %v3794_v16, %v4894_v5  ;;  %3813 = vrcp.f32 %v2558_v0 }
 0x20a   :  { %v3798_v20 = vpop.eup %3797  ;;  %2683 = vst [vmem:[%s5035_s3 + $0xb0] sm:$0xff] %v2651_v21  ;;  %v2652_v51 = vmul.f32 %v3796_v2, %v4897_v31 }
 0x20b   :  { %v3800_v26 = vpop.eup %3799  ;;  %2681 = vst [vmem:[%s5035_s3 + $0xa0] sm:$0xff] %v2649_v53  ;;  %v2650_v36 = vmul.f32 %v3798_v20, %v4900_v19 }
 0x20c   :  { %v3802_v38 = vpop.eup %3801  ;;  %2684 = vst [vmem:[%s5035_s3 + $0xb8] sm:$0xff] %v2652_v51  ;;  %v2563_v5 = vadd.f32 1.0, %v3800_v26 }
 0x20d   :  { %v3804_v9 = vpop.eup %3803  ;;  %2682 = vst [vmem:[%s5035_s3 + $0xa8] sm:$0xff] %v2650_v36  ;;  %v2561_v11 = vadd.f32 1.0, %v3802_v38 }
 0x20e   :  { %v3806_v31 = vpop.eup %3805  ;;  %3815 = vrcp.f32 %v2563_v5  ;;  %v2564_v62 = vadd.f32 1.0, %v3804_v9 }
 0x20f   :  { %3817 = vrcp.f32 %v2561_v11  ;;  %v2562_v40 = vadd.f32 1.0, %v3806_v31 }
 0x210   :  { %v3808_v1 = vpop.eup %3807  ;;  %3819 = vrcp.f32 %v2564_v62 }
 0x211   :  { %v3810_v19 = vpop.eup %3809  ;;  %v2655_v58 = vmul.f32 %v3808_v1, %v4917_v52  ;;  %3821 = vrcp.f32 %v2562_v40 }
 0x212   :  { %v3812_v34 = vpop.eup %3811  ;;  %v2653_v33 = vmul.f32 %v3810_v19, %v4923_v44 }
 0x213   :  { %v3814_v22 = vpop.eup %3813  ;;  %2687 = vst [vmem:[%s5035_s3 + $0xd0] sm:$0xff] %v2655_v58  ;;  %v2656_v30 = vmul.f32 %v3812_v34, %v4928_v37 }
 0x214   :  { %2685 = vst [vmem:[%s5035_s3 + $0xc0] sm:$0xff] %v2653_v33  ;;  %v2654_v46 = vmul.f32 %v3814_v22, %v4931_v48 }
 0x215   :  { %2688 = vst [vmem:[%s5035_s3 + $0xd8] sm:$0xff] %v2656_v30 }
 0x216   :  { %2686 = vst [vmem:[%s5035_s3 + $0xc8] sm:$0xff] %v2654_v46 }
 0x218   :  { %v3816_v52 = vpop.eup %3815 }
 0x219   :  { %v3818_v44 = vpop.eup %3817  ;;  %v2659_v59 = vmul.f32 %v3816_v52, %v4949_v56 }
 0x21a   :  { %v3820_v12 = vpop.eup %3819  ;;  %v2657_v37 = vmul.f32 %v3818_v44, %v4955_v54 }
 0x21b   :  { %v3822_v29 = vpop.eup %3821  ;;  %2691 = vst [vmem:[%s5035_s3 + $0xf0] sm:$0xff] %v2659_v59  ;;  %v2660_v48 = vmul.f32 %v3820_v12, %v4960_v32 }
 0x21c   :  { %2689 = vst [vmem:[%s5035_s3 + $0xe0] sm:$0xff] %v2657_v37  ;;  %v2658_v61 = vmul.f32 %v3822_v29, %v4963_v55 }
 0x21d   :  { %2692 = vst [vmem:[%s5035_s3 + $0xf8] sm:$0xff] %v2660_v48 }
 0x21e   :  { %2690 = vst [vmem:[%s5035_s3 + $0xe8] sm:$0xff] %v2658_v61 }

</bundles_post_ra>
